<compile_context>
chip_gen: v7x
topology: tpu7x:2x2x1
jax: 0.10.0
libtpu: 0.0.40
codegen_flags: <defaults>
</compile_context>

<pallas_src>
import functools

import jax
import jax.numpy as jnp
from jax.experimental import pallas as pl
from jax.experimental.pallas import tpu as pltpu


# --------------------------------------------------------------------------- #
# Kernel
# --------------------------------------------------------------------------- #
def _lora_qkv_kernel(x_ref,       # VMEM (TM, C)          activations
                     wqkv_ref,    # VMEM (C, 3C)          W_qkv^T (frozen)
                     bqkv_ref,    # VMEM (1, 3C)          b_qkv
                     wa_ref,      # VMEM (C, 2r)          [Wa_q^T | Wa_v^T]
                     wbq_ref,     # VMEM (r, C)           alpha * Wb_q^T
                     wbv_ref,     # VMEM (r, C)           alpha * Wb_v^T
                     out_ref):    # VMEM (TM, 3C)
    c = wbq_ref.shape[1]
    r = wbq_ref.shape[0]

    x = x_ref[...]

    # Base qkv projection (frozen SAM weights); f32 accumulation on the MXU.
    qkv = jnp.dot(x, wqkv_ref[...], preferred_element_type=jnp.float32)
    qkv = qkv + bqkv_ref[...].astype(jnp.float32)

    # Fused LoRA "A" projection for q and v:  x @ [Wa_q^T | Wa_v^T] -> (TM, 2r)
    a = jnp.dot(x, wa_ref[...], preferred_element_type=jnp.float32)
    a = a.astype(wbq_ref.dtype)

    # LoRA "B" projections (alpha already folded into the weights).
    new_q = jnp.dot(a[:, :r], wbq_ref[...], preferred_element_type=jnp.float32)
    new_v = jnp.dot(a[:, r:], wbv_ref[...], preferred_element_type=jnp.float32)

    # Direct slice stores — no concatenate (q | k | v).
    out_ref[:, :c] = (qkv[:, :c] + new_q).astype(out_ref.dtype)
    out_ref[:, c:2 * c] = qkv[:, c:2 * c].astype(out_ref.dtype)
    out_ref[:, 2 * c:] = (qkv[:, 2 * c:] + new_v).astype(out_ref.dtype)


# --------------------------------------------------------------------------- #
# Helpers
# --------------------------------------------------------------------------- #
def _round_up(x, m):
    return (x + m - 1) // m * m


@functools.lru_cache(maxsize=1)
def _default_tm():
    """Generation-dependent row tile: 128 on v5e (128x128 MXU), else 256."""
    try:
        kind = jax.devices()[0].device_kind.lower()
    except Exception:
        return 256
    if "v5 lite" in kind or "v5e" in kind or "v5litepod" in kind:
        return 128
    return 256


@functools.lru_cache(maxsize=1)
def _default_vmem_limit():
    """Explicit scoped-VMEM limit: 3/4 of physical VMEM, with a safe fallback."""
    try:
        cap = pltpu.get_tpu_info().vmem_capacity_bytes
        return int(cap) * 3 // 4
    except Exception:
        return 48 * 1024 * 1024


@functools.partial(jax.jit,
                   static_argnames=("tm", "weight_buffers", "vmem_limit_bytes"))
def _attention_lora_qkv_impl(x2, wqkv_t, bqkv2, wa_t, wbq_t, wbv_t,
                             *, tm, weight_buffers, vmem_limit_bytes):
    n_rows, c = x2.shape
    r2 = wa_t.shape[1]
    r = wbq_t.shape[0]
    grid = (n_rows // tm,)

    def _fixed(i):
        return (0, 0)

    if weight_buffers is None:
        def wspec(shape):
            return pl.BlockSpec(shape, _fixed)
    else:
        # Grid-invariant blocks: single-buffer them to halve their VMEM footprint.
        def wspec(shape):
            return pl.BlockSpec(shape, _fixed,
                                pipeline_mode=pl.Buffered(weight_buffers))

    return pl.pallas_call(
        _lora_qkv_kernel,
        out_shape=jax.ShapeDtypeStruct((n_rows, 3 * c), x2.dtype),
        grid=grid,
        in_specs=[
            pl.BlockSpec((tm, c), lambda i: (i, 0)),   # x rows (pipelined)
            wspec((c, 3 * c)),                         # W_qkv^T
            wspec((1, 3 * c)),                         # b_qkv
            wspec((c, r2)),                            # [Wa_q^T | Wa_v^T]
            wspec((r, c)),                             # alpha * Wb_q^T
            wspec((r, c)),                             # alpha * Wb_v^T
        ],
        out_specs=pl.BlockSpec((tm, 3 * c), lambda i: (i, 0)),
        compiler_params=pltpu.CompilerParams(
            dimension_semantics=("parallel",),
            vmem_limit_bytes=vmem_limit_bytes),
    )(x2, wqkv_t, bqkv2, wa_t, wbq_t, wbv_t)


def attention_lora_qkv(x_bhwc, w_qkv, b_qkv, w_a_q, w_b_q, w_a_v, w_b_v, alpha,
                       *, tm=None):
    """Fused AttentionLoRA qkv forward.

    x_bhwc : [B, H, W, C] channels-last activations.
    w_qkv  : [3C, C]  (PyTorch nn.Linear weight), b_qkv: [3C]
    w_a_*  : [r, C],  w_b_* : [C, r]  (PyTorch nn.Linear weights)
    alpha  : scalar LoRA scaling.
    Returns [B, H, W, 3C].
    """
    B, H, W, C = x_bhwc.shape
    N = B * H * W

    if tm is None:
        tm = _default_tm()
    tm = min(tm, _round_up(N, 8))       # never tile larger than (padded) N
    n_pad = _round_up(N, tm)

    x2 = x_bhwc.reshape(N, C)
    if n_pad != N:                      # ragged tail: pad rows, slice back below
        x2 = jnp.pad(x2, ((0, n_pad - N), (0, 0)))

    alpha = jnp.asarray(alpha, jnp.float32)
    wqkv_t = w_qkv.T                                          # [C, 3C]
    bqkv2 = b_qkv.reshape(1, 3 * C)                           # [1, 3C]
    wa_t = jnp.concatenate([w_a_q.T, w_a_v.T], axis=1)        # [C, 2r] fused A
    wbq_t = (alpha * w_b_q.astype(jnp.float32)).astype(w_b_q.dtype).T   # [r, C]
    wbv_t = (alpha * w_b_v.astype(jnp.float32)).astype(w_b_v.dtype).T   # [r, C]

    args = (x2, wqkv_t, bqkv2, wa_t, wbq_t, wbv_t)
    kwargs = dict(tm=tm, vmem_limit_bytes=_default_vmem_limit())
    try:
        out = _attention_lora_qkv_impl(*args, weight_buffers=1, **kwargs)
    except Exception:
        # Fallback if this jax build doesn't support pipeline_mode=pl.Buffered(1).
        out = _attention_lora_qkv_impl(*args, weight_buffers=None, **kwargs)

    if n_pad != N:
        out = out[:N]
    return out.reshape(B, H, W, 3 * C)


# --------------------------------------------------------------------------- #
# Pure-JAX reference (matches AttentionLoRA.forward semantics)
# --------------------------------------------------------------------------- #
def _reference(x, w_qkv, b_qkv, w_a_q, w_b_q, w_a_v, w_b_v, alpha):
    C = x.shape[-1]
    hi = jax.lax.Precision.HIGHEST
    qkv = jnp.einsum("bhwc,oc->bhwo", x, w_qkv, precision=hi) + b_qkv
    new_q = alpha * jnp.einsum(
        "bhwr,cr->bhwc",
        jnp.einsum("bhwc,rc->bhwr", x, w_a_q, precision=hi), w_b_q, precision=hi)
    new_v = alpha * jnp.einsum(
        "bhwr,cr->bhwc",
        jnp.einsum("bhwc,rc->bhwr", x, w_a_v, precision=hi), w_b_v, precision=hi)
    return jnp.concatenate(
        [qkv[..., :C] + new_q, qkv[..., C:2 * C], qkv[..., 2 * C:] + new_v],
        axis=-1)


def _run_case(key, B, H, W, C, r, alpha):
    ks = jax.random.split(key, 7)
    x = jax.random.normal(ks[0], (B, H, W, C), jnp.float32)
    # NOTE: the PyTorch module zero-inits the LoRA "B" matrices; random values are
    # used here so the full LoRA path is exercised and numerically checked.
    w_qkv = jax.random.normal(ks[1], (3 * C, C), jnp.float32) * 0.05
    b_qkv = jax.random.normal(ks[2], (3 * C,), jnp.float32) * 0.05
    w_a_q = jax.random.normal(ks[3], (r, C), jnp.float32) * 0.1
    w_b_q = jax.random.normal(ks[4], (C, r), jnp.float32) * 0.1
    w_a_v = jax.random.normal(ks[5], (r, C), jnp.float32) * 0.1
    w_b_v = jax.random.normal(ks[6], (C, r), jnp.float32) * 0.1

    out = attention_lora_qkv(x, w_qkv, b_qkv, w_a_q, w_b_q, w_a_v, w_b_v, alpha)
    out = jax.block_until_ready(out)
    ref = _reference(x, w_qkv, b_qkv, w_a_q, w_b_q, w_a_v, w_b_v, alpha)

    assert out.shape == (B, H, W, 3 * C)
    assert jnp.allclose(out, ref, atol=1e-3, rtol=1e-3), (
        float(jnp.max(jnp.abs(out - ref))))


if __name__ == "__main__":
    key = jax.random.PRNGKey(0)
    k1, k2 = jax.random.split(key)

    # Small-shape case (dim=32, rank=4, 3C=96 lanes).
    _run_case(k1, B=2, H=8, W=8, C=32, r=4, alpha=1.0)

    # Lane-aligned C (multiple of 128) + ragged row count (N=49) + alpha != 1,
    # exercising the padded tail and the slice-store epilogue on aligned lanes.
    _run_case(k2, B=1, H=7, W=7, C=128, r=4, alpha=0.5)

    print("KERNEL_OK")
</pallas_src>

<mosaic_0001>
module attributes {stable_mosaic.version = 11 : i64} {
  func.func @_lora_qkv_kernel(%arg0: i32, %arg1: memref<128x32xf32, #tpu.memory_space<vmem>>, %arg2: memref<32x96xf32, #tpu.memory_space<vmem>>, %arg3: memref<1x96xf32, #tpu.memory_space<vmem>>, %arg4: memref<32x8xf32, #tpu.memory_space<vmem>>, %arg5: memref<4x32xf32, #tpu.memory_space<vmem>>, %arg6: memref<4x32xf32, #tpu.memory_space<vmem>>, %arg7: memref<128x96xf32, #tpu.memory_space<vmem>>) attributes {dimension_semantics = [#tpu.dimension_semantics<parallel>], iteration_bounds = array<i64: 1>, scalar_prefetch = 0 : i64, scratch_operands = 0 : i64, tpu.core_type = #tpu.core_type<tc>, window_params = [{transform_indices = @transform_0, window_bounds = array<i64: 128, 32>}, {pipeline_mode = #tpu.pipeline_mode<synchronous>, transform_indices = @transform_1, window_bounds = array<i64: 32, 96>}, {pipeline_mode = #tpu.pipeline_mode<synchronous>, transform_indices = @transform_2, window_bounds = array<i64: 1, 96>}, {pipeline_mode = #tpu.pipeline_mode<synchronous>, transform_indices = @transform_3, window_bounds = array<i64: 32, 8>}, {pipeline_mode = #tpu.pipeline_mode<synchronous>, transform_indices = @transform_4, window_bounds = array<i64: 4, 32>}, {pipeline_mode = #tpu.pipeline_mode<synchronous>, transform_indices = @transform_5, window_bounds = array<i64: 4, 32>}, {transform_indices = @transform_6, window_bounds = array<i64: 128, 96>}]} {
    %c0 = arith.constant 0 : index
    %c0_0 = arith.constant 0 : index
    %0 = vector.load %arg1[%c0, %c0_0] : memref<128x32xf32, #tpu.memory_space<vmem>>, vector<128x32xf32>
    %c0_1 = arith.constant 0 : index
    %c0_2 = arith.constant 0 : index
    %1 = vector.load %arg2[%c0_1, %c0_2] : memref<32x96xf32, #tpu.memory_space<vmem>>, vector<32x96xf32>
    %cst = arith.constant dense<0.000000e+00> : vector<128x96xf32>
    %2 = tpu.matmul %0, %1, %cst {dimension_numbers = #tpu.dot_dimension_numbers<[1], [0], [0], [1], [0, 0, 1, 1], [], []>} : vector<128x32xf32>, vector<32x96xf32>, vector<128x96xf32> -> vector<128x96xf32>
    %c0_3 = arith.constant 0 : index
    %c0_4 = arith.constant 0 : index
    %3 = vector.load %arg3[%c0_3, %c0_4] : memref<1x96xf32, #tpu.memory_space<vmem>>, vector<1x96xf32>
    %4 = vector.broadcast %3 : vector<1x96xf32> to vector<128x96xf32>
    %5 = arith.addf %2, %4 : vector<128x96xf32>
    %c0_5 = arith.constant 0 : index
    %c0_6 = arith.constant 0 : index
    %6 = vector.load %arg4[%c0_5, %c0_6] : memref<32x8xf32, #tpu.memory_space<vmem>>, vector<32x8xf32>
    %cst_7 = arith.constant dense<0.000000e+00> : vector<128x8xf32>
    %7 = tpu.matmul %0, %6, %cst_7 {dimension_numbers = #tpu.dot_dimension_numbers<[1], [0], [0], [1], [0, 0, 1, 1], [], []>} : vector<128x32xf32>, vector<32x8xf32>, vector<128x8xf32> -> vector<128x8xf32>
    %8 = vector.extract_strided_slice %7 {offsets = [0, 0], sizes = [128, 4], strides = [1, 1]} : vector<128x8xf32> to vector<128x4xf32>
    %c0_8 = arith.constant 0 : index
    %c0_9 = arith.constant 0 : index
    %9 = vector.load %arg5[%c0_8, %c0_9] : memref<4x32xf32, #tpu.memory_space<vmem>>, vector<4x32xf32>
    %cst_10 = arith.constant dense<0.000000e+00> : vector<128x32xf32>
    %10 = tpu.matmul %8, %9, %cst_10 {dimension_numbers = #tpu.dot_dimension_numbers<[1], [0], [0], [1], [0, 0, 1, 1], [], []>} : vector<128x4xf32>, vector<4x32xf32>, vector<128x32xf32> -> vector<128x32xf32>
    %11 = vector.extract_strided_slice %7 {offsets = [0, 4], sizes = [128, 4], strides = [1, 1]} : vector<128x8xf32> to vector<128x4xf32>
    %c0_11 = arith.constant 0 : index
    %c0_12 = arith.constant 0 : index
    %12 = vector.load %arg6[%c0_11, %c0_12] : memref<4x32xf32, #tpu.memory_space<vmem>>, vector<4x32xf32>
    %cst_13 = arith.constant dense<0.000000e+00> : vector<128x32xf32>
    %13 = tpu.matmul %11, %12, %cst_13 {dimension_numbers = #tpu.dot_dimension_numbers<[1], [0], [0], [1], [0, 0, 1, 1], [], []>} : vector<128x4xf32>, vector<4x32xf32>, vector<128x32xf32> -> vector<128x32xf32>
    %14 = vector.extract_strided_slice %5 {offsets = [0, 0], sizes = [128, 32], strides = [1, 1]} : vector<128x96xf32> to vector<128x32xf32>
    %15 = arith.addf %14, %10 : vector<128x32xf32>
    %c0_14 = arith.constant 0 : index
    %c0_15 = arith.constant 0 : index
    %16 = vector.load %arg7[%c0_14, %c0_15] : memref<128x96xf32, #tpu.memory_space<vmem>>, vector<128x32xf32>
    tpu.vector_store %arg7[%c0_14, %c0_15], %15 {strides = array<i32>} : memref<128x96xf32, #tpu.memory_space<vmem>>, vector<128x32xf32>,
    %17 = vector.extract_strided_slice %5 {offsets = [0, 32], sizes = [128, 32], strides = [1, 1]} : vector<128x96xf32> to vector<128x32xf32>
    %c0_16 = arith.constant 0 : index
    %c32 = arith.constant 32 : index
    %18 = vector.load %arg7[%c0_16, %c32] : memref<128x96xf32, #tpu.memory_space<vmem>>, vector<128x32xf32>
    tpu.vector_store %arg7[%c0_16, %c32], %17 {strides = array<i32>} : memref<128x96xf32, #tpu.memory_space<vmem>>, vector<128x32xf32>,
    %19 = vector.extract_strided_slice %5 {offsets = [0, 64], sizes = [128, 32], strides = [1, 1]} : vector<128x96xf32> to vector<128x32xf32>
    %20 = arith.addf %19, %13 : vector<128x32xf32>
    %c0_17 = arith.constant 0 : index
    %c64 = arith.constant 64 : index
    %21 = vector.load %arg7[%c0_17, %c64] : memref<128x96xf32, #tpu.memory_space<vmem>>, vector<128x32xf32>
    tpu.vector_store %arg7[%c0_17, %c64], %20 {strides = array<i32>} : memref<128x96xf32, #tpu.memory_space<vmem>>, vector<128x32xf32>,
    return
  }
  func.func @transform_0(%arg0: i32) -> (i32, i32) {
    %c0_i32 = arith.constant 0 : i32
    %c0_i32_0 = arith.constant 0 : i32
    return %arg0, %c0_i32 : i32, i32
  }
  func.func @transform_1(%arg0: i32) -> (i32, i32) {
    %c0_i32 = arith.constant 0 : i32
    %c0_i32_0 = arith.constant 0 : i32
    %c0_i32_1 = arith.constant 0 : i32
    return %c0_i32, %c0_i32_0 : i32, i32
  }
  func.func @transform_2(%arg0: i32) -> (i32, i32) {
    %c0_i32 = arith.constant 0 : i32
    %c0_i32_0 = arith.constant 0 : i32
    %c0_i32_1 = arith.constant 0 : i32
    return %c0_i32, %c0_i32_0 : i32, i32
  }
  func.func @transform_3(%arg0: i32) -> (i32, i32) {
    %c0_i32 = arith.constant 0 : i32
    %c0_i32_0 = arith.constant 0 : i32
    %c0_i32_1 = arith.constant 0 : i32
    return %c0_i32, %c0_i32_0 : i32, i32
  }
  func.func @transform_4(%arg0: i32) -> (i32, i32) {
    %c0_i32 = arith.constant 0 : i32
    %c0_i32_0 = arith.constant 0 : i32
    %c0_i32_1 = arith.constant 0 : i32
    return %c0_i32, %c0_i32_0 : i32, i32
  }
  func.func @transform_5(%arg0: i32) -> (i32, i32) {
    %c0_i32 = arith.constant 0 : i32
    %c0_i32_0 = arith.constant 0 : i32
    %c0_i32_1 = arith.constant 0 : i32
    return %c0_i32, %c0_i32_0 : i32, i32
  }
  func.func @transform_6(%arg0: i32) -> (i32, i32) {
    %c0_i32 = arith.constant 0 : i32
    %c0_i32_0 = arith.constant 0 : i32
    return %arg0, %c0_i32 : i32, i32
  }
}

module attributes {stable_mosaic.version = 11 : i64} {
  func.func @_lora_qkv_kernel(%arg0: i32, %arg1: memref<128x32xf32, #tpu.memory_space<vmem>>, %arg2: memref<32x96xf32, #tpu.memory_space<vmem>>, %arg3: memref<1x96xf32, #tpu.memory_space<vmem>>, %arg4: memref<32x8xf32, #tpu.memory_space<vmem>>, %arg5: memref<4x32xf32, #tpu.memory_space<vmem>>, %arg6: memref<4x32xf32, #tpu.memory_space<vmem>>, %arg7: memref<128x96xf32, #tpu.memory_space<vmem>>) attributes {dimension_semantics = [#tpu.dimension_semantics<parallel>], iteration_bounds = array<i64: 1>, scalar_prefetch = 0 : i64, scratch_operands = 0 : i64, tpu.core_type = #tpu.core_type<tc>, window_params = [{transform_indices = @transform_0, window_bounds = array<i64: 128, 32>}, {pipeline_mode = #tpu.pipeline_mode<synchronous>, transform_indices = @transform_1, window_bounds = array<i64: 32, 96>}, {pipeline_mode = #tpu.pipeline_mode<synchronous>, transform_indices = @transform_2, window_bounds = array<i64: 1, 96>}, {pipeline_mode = #tpu.pipeline_mode<synchronous>, transform_indices = @transform_3, window_bounds = array<i64: 32, 8>}, {pipeline_mode = #tpu.pipeline_mode<synchronous>, transform_indices = @transform_4, window_bounds = array<i64: 4, 32>}, {pipeline_mode = #tpu.pipeline_mode<synchronous>, transform_indices = @transform_5, window_bounds = array<i64: 4, 32>}, {transform_indices = @transform_6, window_bounds = array<i64: 128, 96>}]} {
    %c0 = arith.constant 0 : index
    %c0_0 = arith.constant 0 : index
    %0 = vector.load %arg1[%c0, %c0_0] : memref<128x32xf32, #tpu.memory_space<vmem>>, vector<128x32xf32>
    %c0_1 = arith.constant 0 : index
    %c0_2 = arith.constant 0 : index
    %1 = vector.load %arg2[%c0_1, %c0_2] : memref<32x96xf32, #tpu.memory_space<vmem>>, vector<32x96xf32>
    %cst = arith.constant dense<0.000000e+00> : vector<128x96xf32>
    %2 = tpu.matmul %0, %1, %cst {dimension_numbers = #tpu.dot_dimension_numbers<[1], [0], [0], [1], [0, 0, 1, 1], [], []>} : vector<128x32xf32>, vector<32x96xf32>, vector<128x96xf32> -> vector<128x96xf32>
    %c0_3 = arith.constant 0 : index
    %c0_4 = arith.constant 0 : index
    %3 = vector.load %arg3[%c0_3, %c0_4] : memref<1x96xf32, #tpu.memory_space<vmem>>, vector<1x96xf32>
    %4 = vector.broadcast %3 : vector<1x96xf32> to vector<128x96xf32>
    %5 = arith.addf %2, %4 : vector<128x96xf32>
    %c0_5 = arith.constant 0 : index
    %c0_6 = arith.constant 0 : index
    %6 = vector.load %arg4[%c0_5, %c0_6] : memref<32x8xf32, #tpu.memory_space<vmem>>, vector<32x8xf32>
    %cst_7 = arith.constant dense<0.000000e+00> : vector<128x8xf32>
    %7 = tpu.matmul %0, %6, %cst_7 {dimension_numbers = #tpu.dot_dimension_numbers<[1], [0], [0], [1], [0, 0, 1, 1], [], []>} : vector<128x32xf32>, vector<32x8xf32>, vector<128x8xf32> -> vector<128x8xf32>
    %8 = vector.extract_strided_slice %7 {offsets = [0, 0], sizes = [128, 4], strides = [1, 1]} : vector<128x8xf32> to vector<128x4xf32>
    %c0_8 = arith.constant 0 : index
    %c0_9 = arith.constant 0 : index
    %9 = vector.load %arg5[%c0_8, %c0_9] : memref<4x32xf32, #tpu.memory_space<vmem>>, vector<4x32xf32>
    %cst_10 = arith.constant dense<0.000000e+00> : vector<128x32xf32>
    %10 = tpu.matmul %8, %9, %cst_10 {dimension_numbers = #tpu.dot_dimension_numbers<[1], [0], [0], [1], [0, 0, 1, 1], [], []>} : vector<128x4xf32>, vector<4x32xf32>, vector<128x32xf32> -> vector<128x32xf32>
    %11 = vector.extract_strided_slice %7 {offsets = [0, 4], sizes = [128, 4], strides = [1, 1]} : vector<128x8xf32> to vector<128x4xf32>
    %c0_11 = arith.constant 0 : index
    %c0_12 = arith.constant 0 : index
    %12 = vector.load %arg6[%c0_11, %c0_12] : memref<4x32xf32, #tpu.memory_space<vmem>>, vector<4x32xf32>
    %cst_13 = arith.constant dense<0.000000e+00> : vector<128x32xf32>
    %13 = tpu.matmul %11, %12, %cst_13 {dimension_numbers = #tpu.dot_dimension_numbers<[1], [0], [0], [1], [0, 0, 1, 1], [], []>} : vector<128x4xf32>, vector<4x32xf32>, vector<128x32xf32> -> vector<128x32xf32>
    %14 = vector.extract_strided_slice %5 {offsets = [0, 0], sizes = [128, 32], strides = [1, 1]} : vector<128x96xf32> to vector<128x32xf32>
    %15 = arith.addf %14, %10 : vector<128x32xf32>
    %c0_14 = arith.constant 0 : index
    %c0_15 = arith.constant 0 : index
    %16 = vector.load %arg7[%c0_14, %c0_15] : memref<128x96xf32, #tpu.memory_space<vmem>>, vector<128x32xf32>
    tpu.vector_store %arg7[%c0_14, %c0_15], %15 {strides = array<i32>} : memref<128x96xf32, #tpu.memory_space<vmem>>, vector<128x32xf32>,
    %17 = vector.extract_strided_slice %5 {offsets = [0, 32], sizes = [128, 32], strides = [1, 1]} : vector<128x96xf32> to vector<128x32xf32>
    %c0_16 = arith.constant 0 : index
    %c32 = arith.constant 32 : index
    %18 = vector.load %arg7[%c0_16, %c32] : memref<128x96xf32, #tpu.memory_space<vmem>>, vector<128x32xf32>
    tpu.vector_store %arg7[%c0_16, %c32], %17 {strides = array<i32>} : memref<128x96xf32, #tpu.memory_space<vmem>>, vector<128x32xf32>,
    %19 = vector.extract_strided_slice %5 {offsets = [0, 64], sizes = [128, 32], strides = [1, 1]} : vector<128x96xf32> to vector<128x32xf32>
    %20 = arith.addf %19, %13 : vector<128x32xf32>
    %c0_17 = arith.constant 0 : index
    %c64 = arith.constant 64 : index
    %21 = vector.load %arg7[%c0_17, %c64] : memref<128x96xf32, #tpu.memory_space<vmem>>, vector<128x32xf32>
    tpu.vector_store %arg7[%c0_17, %c64], %20 {strides = array<i32>} : memref<128x96xf32, #tpu.memory_space<vmem>>, vector<128x32xf32>,
    return
  }
  func.func @transform_0(%arg0: i32) -> (i32, i32) {
    %c0_i32 = arith.constant 0 : i32
    %c0_i32_0 = arith.constant 0 : i32
    return %arg0, %c0_i32 : i32, i32
  }
  func.func @transform_1(%arg0: i32) -> (i32, i32) {
    %c0_i32 = arith.constant 0 : i32
    %c0_i32_0 = arith.constant 0 : i32
    %c0_i32_1 = arith.constant 0 : i32
    return %c0_i32, %c0_i32_0 : i32, i32
  }
  func.func @transform_2(%arg0: i32) -> (i32, i32) {
    %c0_i32 = arith.constant 0 : i32
    %c0_i32_0 = arith.constant 0 : i32
    %c0_i32_1 = arith.constant 0 : i32
    return %c0_i32, %c0_i32_0 : i32, i32
  }
  func.func @transform_3(%arg0: i32) -> (i32, i32) {
    %c0_i32 = arith.constant 0 : i32
    %c0_i32_0 = arith.constant 0 : i32
    %c0_i32_1 = arith.constant 0 : i32
    return %c0_i32, %c0_i32_0 : i32, i32
  }
  func.func @transform_4(%arg0: i32) -> (i32, i32) {
    %c0_i32 = arith.constant 0 : i32
    %c0_i32_0 = arith.constant 0 : i32
    %c0_i32_1 = arith.constant 0 : i32
    return %c0_i32, %c0_i32_0 : i32, i32
  }
  func.func @transform_5(%arg0: i32) -> (i32, i32) {
    %c0_i32 = arith.constant 0 : i32
    %c0_i32_0 = arith.constant 0 : i32
    %c0_i32_1 = arith.constant 0 : i32
    return %c0_i32, %c0_i32_0 : i32, i32
  }
  func.func @transform_6(%arg0: i32) -> (i32, i32) {
    %c0_i32 = arith.constant 0 : i32
    %c0_i32_0 = arith.constant 0 : i32
    return %arg0, %c0_i32 : i32, i32
  }
}

</mosaic_0001>

<bundles_post_ra>
// kernel: _attention_lora_qkv_impl.1
= control target key start
LH: loop header
LB: loop body
LE: loop exit
PB: predicated region body
PF: predicated region fallthrough
CT: control target
= control target key end

     0   :  { %vm50_vm0 = vcmask 261120   ;;  %vm443_vm1 = vcmask 1043456   ;;  %vm394_vm2 = vcmask 31744   ;;  %s1230_s20 = smov 124   ;;  %vm837_vm3 = vcmask 523520   ;;  %s1231_s24 = smov 64   ;;  %s1782_s3 = inlined_call_operand.vmem [shape: f32[32,8], index: 3, kind: input, shape index: {}]   ;;  %s1783_s0 = inlined_call_operand.vmem [shape: f32[128,32], index: 0, kind: input, shape index: {}]   ;;  %s1784_s1 = inlined_call_operand.vmem [shape: f32[32,96], index: 1, kind: input, shape index: {}]   ;;  %s1785_s4 = inlined_call_operand.vmem [shape: f32[4,32], index: 4, kind: input, shape index: {}]   ;;  %s1786_s5 = inlined_call_operand.vmem [shape: f32[4,32], index: 5, kind: input, shape index: {}]   ;;  %s1787_s2 = inlined_call_operand.vmem [shape: f32[1,96], index: 2, kind: input, shape index: {}]   ;;  %s1788_s6 = inlined_call_operand.vmem [shape: f32[128,96], index: 6, kind: output, shape index: {}]  }
   0x1   :  { %v244_v0 = vld [vmem:[%s1782_s3] sm:$0xff]  ;;  %v245_v1 = vld [vmem:[%s1782_s3 + $0x8] sm:$0xff]  ;;  %v246_v2 = vld [vmem:[%s1782_s3 + $0x10] sm:$0xff]  ;;  %vm934_vm4 = vcmask 785920  }
   0x2   :  { %v1220_v3 = vpack.c.bf16 %v245_v1, %v244_v0  ;;  %v247_v4 = vld [vmem:[%s1782_s3 + $0x18] sm:$0xff]  ;;  %v23_v5 = vld [vmem:[%s1783_s0] sm:$0xff]  ;;  %v40_v8 = vld [vmem:[%s1784_s1 + $0x8] sm:$0xff] }
   0x3   :  { %v1224_v6 = vpack.c.bf16 %v247_v4, %v246_v2  ;;  %1136 = vmatprep.mubr.msk.f32.mxu1 %vm50_vm0, %v23_v5  ;;  %1104 = vmatprep.mubr.msk.f32.mxu0 %vm50_vm0, %v23_v5  ;;  %v39_v7 = vld [vmem:[%s1784_s1] sm:$0xff]  ;;  %v41_v9 = vld [vmem:[%s1784_s1 + $0x10] sm:$0xff]  ;;  %v42_v10 = vld [vmem:[%s1784_s1 + $0x18] sm:$0xff] }
   0x4   :  { %1221 = vmatprep.subr.bf16.mxu1 %v1220_v3  ;;  %v24_v11 = vld [vmem:[%s1783_s0 + $0x8] sm:$0xff]  ;;  %v1212_v12 = vpack.c.bf16 %v40_v8, %v39_v7  ;;  %v1216_v13 = vpack.c.bf16 %v42_v10, %v41_v9  ;;  %v25_v14 = vld [vmem:[%s1783_s0 + $0x10] sm:$0xff]  ;;  %v26_v15 = vld [vmem:[%s1783_s0 + $0x18] sm:$0xff] }
   0x5   :  { %1223 = vmatpush3.bf16.msra.mxu1 %v1220_v3  ;;  %v27_v16 = vld [vmem:[%s1783_s0 + $0x20] sm:$0xff]  ;;  %v28_v17 = vld [vmem:[%s1783_s0 + $0x28] sm:$0xff]  ;;  %v29_v18 = vld [vmem:[%s1783_s0 + $0x30] sm:$0xff] }
   0x6   :  { %1225 = vmatprep.subr.bf16.mxu1 %v1224_v6  ;;  %1213 = vmatprep.subr.bf16.mxu0 %v1212_v12  ;;  %v30_v19 = vld [vmem:[%s1783_s0 + $0x38] sm:$0xff]  ;;  %v31_v20 = vld [vmem:[%s1783_s0 + $0x40] sm:$0xff]  ;;  %v32_v21 = vld [vmem:[%s1783_s0 + $0x48] sm:$0xff] }
   0x7   :  { %1215 = vmatpush3.bf16.msra.mxu0 %v1212_v12  ;;  %v33_v22 = vld [vmem:[%s1783_s0 + $0x50] sm:$0xff]  ;;  %v34_v23 = vld [vmem:[%s1783_s0 + $0x58] sm:$0xff]  ;;  %v35_v24 = vld [vmem:[%s1783_s0 + $0x60] sm:$0xff] }
   0x8   :  { %1217 = vmatprep.subr.bf16.mxu0 %v1216_v13  ;;  %v36_v25 = vld [vmem:[%s1783_s0 + $0x68] sm:$0xff]  ;;  %v37_v26 = vld [vmem:[%s1783_s0 + $0x70] sm:$0xff]  ;;  %v38_v27 = vld [vmem:[%s1783_s0 + $0x78] sm:$0xff] }
   0x9   :  { %1227 = vmatpush3.bf16.msra.mxu1 %v1224_v6  ;;  %v393_v28 = vld [vmem:[%s1785_s4] sm:$0xf] }
   0xa   :  { %v592_v29 = vld [vmem:[%s1786_s5] sm:$0xf] }
   0xb   :  { %1219 = vmatpush3.bf16.msra.mxu0 %v1216_v13  ;;  %1186 = vmatprep.subr.msk.mxu1 %vm443_vm1, %v592_v29 }
   0xc   :  { %1137 = vmatmul.mubr.msk.f32.vlgmr.msra.gmra.mrb[0].mxu1 %vm50_vm0, %v24_v11  ;;  %1160 = vmatprep.subr.msk.mxu0 %vm443_vm1, %v393_v28 }
   0xd   :  { %1139 = vmatprep.mubr.msk.f32.mxu1 %vm50_vm0, %v25_v14  ;;  %1187 = vmatpush3.msk.msra.mxu1 %vm443_vm1, %v592_v29 }
   0xe   :  { %1105 = vmatmul.mubr.msk.f32.vlgmr.msra.gmra.mrb[0].mxu0 %vm50_vm0, %v24_v11 }
   0xf   :  { %1107 = vmatprep.mubr.msk.f32.mxu0 %vm50_vm0, %v25_v14  ;;  %1161 = vmatpush3.msk.msra.mxu0 %vm443_vm1, %v393_v28  ;;  %v1460_v14 = vld [vmem:[%s1787_s2] ss:$0 sm:$0xff] }
  0x10   :  { %1140 = vmatmul.mubr.msk.f32.gmra.mrb[2].mxu1 %vm50_vm0, %v26_v15 }
  0x11   :  { %1142 = vmatprep.mubr.msk.f32.mxu1 %vm50_vm0, %v27_v16 }
  0x12   :  { %1108 = vmatmul.mubr.msk.f32.gmra.mrb[2].mxu0 %vm50_vm0, %v26_v15 }
  0x13   :  { %1110 = vmatprep.mubr.msk.f32.mxu0 %vm50_vm0, %v27_v16 }
  0x14   :  { %1143 = vmatmul.mubr.msk.f32.gmra.mrb[4].mxu1 %vm50_vm0, %v28_v17 }
  0x15   :  { %1145 = vmatprep.mubr.msk.f32.mxu1 %vm50_vm0, %v29_v18 }
  0x16   :  { %1111 = vmatmul.mubr.msk.f32.gmra.mrb[4].mxu0 %vm50_vm0, %v28_v17 }
  0x17   :  { %1113 = vmatprep.mubr.msk.f32.mxu0 %vm50_vm0, %v29_v18 }
  0x18   :  { %1146 = vmatmul.mubr.msk.f32.gmra.mrb[6].mxu1 %vm50_vm0, %v30_v19 }
  0x19   :  { %1148 = vmatprep.mubr.msk.f32.mxu1 %vm50_vm0, %v31_v20 }
  0x1a   :  { %1114 = vmatmul.mubr.msk.f32.gmra.mrb[6].mxu0 %vm50_vm0, %v30_v19 }
  0x1b   :  { %1116 = vmatprep.mubr.msk.f32.mxu0 %vm50_vm0, %v31_v20 }
  0x1c   :  { %1149 = vmatmul.mubr.msk.f32.gmra.mrb[8].mxu1 %vm50_vm0, %v32_v21 }
  0x1d   :  { %1151 = vmatprep.mubr.msk.f32.mxu1 %vm50_vm0, %v33_v22 }
  0x1e   :  { %1117 = vmatmul.mubr.msk.f32.gmra.mrb[8].mxu0 %vm50_vm0, %v32_v21 }
  0x1f   :  { %1119 = vmatprep.mubr.msk.f32.mxu0 %vm50_vm0, %v33_v22 }
  0x20   :  { %1152 = vmatmul.mubr.msk.f32.gmra.mrb[10].mxu1 %vm50_vm0, %v34_v23 }
  0x21   :  { %1154 = vmatprep.mubr.msk.f32.mxu1 %vm50_vm0, %v35_v24 }
  0x22   :  { %1120 = vmatmul.mubr.msk.f32.gmra.mrb[10].mxu0 %vm50_vm0, %v34_v23 }
  0x23   :  { %1122 = vmatprep.mubr.msk.f32.mxu0 %vm50_vm0, %v35_v24 }
  0x24   :  { %1155 = vmatmul.mubr.msk.f32.gmra.mrb[12].mxu1 %vm50_vm0, %v36_v25 }
  0x25   :  { %1157 = vmatprep.mubr.msk.f32.mxu1 %vm50_vm0, %v37_v26 }
  0x26   :  { %1123 = vmatmul.mubr.msk.f32.gmra.mrb[12].mxu0 %vm50_vm0, %v36_v25 }
  0x27   :  { %1125 = vmatprep.mubr.msk.f32.mxu0 %vm50_vm0, %v37_v26 }
  0x28   :  { %1158 = vmatmul.mubr.msk.f32.gmra.mrb[14].mxu1 %vm50_vm0, %v38_v27 }
  0x2a   :  { %1126 = vmatmul.mubr.msk.f32.gmra.mrb[14].mxu0 %vm50_vm0, %v38_v27 }
  0xdf   :  { %v1138_v30 = vpop.f32.mrb[0].mxu1 }
  0xe0   :  { %v314_v31 = vpop.f32.mrb[1].mxu1 }
  0xe1   :  { %593 = vrot.lane.b32.xlu0 %v314_v31, %s1230_s20  ;;  %1162 = vmatprep.mubr.msk.f32.mxu0 %vm394_vm2, %v314_v31  ;;  %v1396_v42 = vpop.f32.mrb[0].mxu0 }
  0xe2   :  { %1163 = vmatmul.mubr.msk.f32.vlgmr.msra.gmra.mrb[16].mxu0 %vm394_vm2, %v1138_v30  ;;  %v1400_v43 = vpop.f32.mrb[1].mxu0  ;;  %v1464_v15 = vadd.f32 %v1396_v42, %v1460_v14 }
  0xe3   :  { %v1141_v32 = vpop.f32.mrb[2].mxu1  ;;  %v1468_v16 = vadd.f32 %v1460_v14, %v1400_v43 }
  0xe4   :  { %v324_v33 = vpop.f32.mrb[3].mxu1 }
  0xe5   :  { %595 = vrot.lane.b32.xlu0 %v1138_v30, %s1230_s20  ;;  %597 = vrot.lane.b32.xlu1 %v324_v33, %s1230_s20  ;;  %v1403_v44 = vpop.f32.mrb[2].mxu0 }
  0xe6   :  { %1165 = vmatprep.mubr.msk.f32.mxu0 %vm394_vm2, %v324_v33  ;;  %v1406_v46 = vpop.f32.mrb[3].mxu0  ;;  %v1473_v20 = vadd.f32 %v1403_v44, %v1460_v14 }
  0xe7   :  { %1166 = vmatmul.mubr.msk.f32.gmra.mrb[18].mxu0 %vm394_vm2, %v1141_v32  ;;  %v1144_v34 = vpop.f32.mrb[4].mxu1  ;;  %v1478_v22 = vadd.f32 %v1460_v14, %v1406_v46 }
  0xe8   :  { %v334_v35 = vpop.f32.mrb[5].mxu1 }
  0xe9   :  { %599 = vrot.lane.b32.xlu1 %v1141_v32, %s1230_s20  ;;  %1168 = vmatprep.mubr.msk.f32.mxu0 %vm394_vm2, %v334_v35  ;;  %v1408_v48 = vpop.f32.mrb[4].mxu0 }
  0xea   :  { %601 = vrot.lane.b32.xlu0 %v334_v35, %s1230_s20  ;;  %v1412_v49 = vpop.f32.mrb[5].mxu0  ;;  %v1500_v24 = vadd.f32 %v1408_v48, %v1460_v14 }
  0xeb   :  { %1169 = vmatmul.mubr.msk.f32.gmra.mrb[20].mxu0 %vm394_vm2, %v1144_v34  ;;  %v1147_v36 = vpop.f32.mrb[6].mxu1  ;;  %v1505_v27 = vadd.f32 %v1460_v14, %v1412_v49 }
  0xec   :  { %v344_v37 = vpop.f32.mrb[7].mxu1 }
  0xed   :  { %603 = vrot.lane.b32.xlu1 %v1144_v34, %s1230_s20  ;;  %1171 = vmatprep.mubr.msk.f32.mxu0 %vm394_vm2, %v344_v37  ;;  %v1415_v50 = vpop.f32.mrb[6].mxu0 }
  0xee   :  { %605 = vrot.lane.b32.xlu0 %v344_v37, %s1230_s20  ;;  %v1418_v52 = vpop.f32.mrb[7].mxu0  ;;  %v1523_v30 = vadd.f32 %v1415_v50, %v1460_v14 }
  0xef   :  { %1172 = vmatmul.mubr.msk.f32.gmra.mrb[22].mxu0 %vm394_vm2, %v1147_v36  ;;  %v1150_v38 = vpop.f32.mrb[8].mxu1  ;;  %v1533_v33 = vadd.f32 %v1460_v14, %v1418_v52 }
  0xf0   :  { %v354_v39 = vpop.f32.mrb[9].mxu1 }
  0xf1   :  { %607 = vrot.lane.b32.xlu1 %v1147_v36, %s1230_s20  ;;  %1174 = vmatprep.mubr.msk.f32.mxu0 %vm394_vm2, %v354_v39  ;;  %v1420_v54 = vpop.f32.mrb[8].mxu0 }
  0xf2   :  { %609 = vrot.lane.b32.xlu0 %v354_v39, %s1230_s20  ;;  %v1424_v55 = vpop.f32.mrb[9].mxu0  ;;  %v1551_v36 = vadd.f32 %v1420_v54, %v1460_v14 }
  0xf3   :  { %1175 = vmatmul.mubr.msk.f32.gmra.mrb[24].mxu0 %vm394_vm2, %v1150_v38  ;;  %v1153_v40 = vpop.f32.mrb[10].mxu1  ;;  %v1561_v39 = vadd.f32 %v1460_v14, %v1424_v55 }
  0xf4   :  { %v364_v41 = vpop.f32.mrb[11].mxu1 }
  0xf5   :  { %611 = vrot.lane.b32.xlu1 %v1150_v38, %s1230_s20  ;;  %1177 = vmatprep.mubr.msk.f32.mxu0 %vm394_vm2, %v364_v41  ;;  %v1427_v56 = vpop.f32.mrb[10].mxu0 }
  0xf6   :  { %613 = vrot.lane.b32.xlu0 %v364_v41, %s1230_s20  ;;  %v1430_v57 = vpop.f32.mrb[11].mxu0  ;;  %v1579_v42 = vadd.f32 %v1427_v56, %v1460_v14 }
  0xf7   :  { %1178 = vmatmul.mubr.msk.f32.gmra.mrb[26].mxu0 %vm394_vm2, %v1153_v40  ;;  %v1156_v45 = vpop.f32.mrb[12].mxu1 }
  0xf8   :  { %v374_v47 = vpop.f32.mrb[13].mxu1 }
  0xf9   :  { %615 = vrot.lane.b32.xlu1 %v1153_v40, %s1230_s20  ;;  %1180 = vmatprep.mubr.msk.f32.mxu0 %vm394_vm2, %v374_v47  ;;  %v1432_v58 = vpop.f32.mrb[12].mxu0 }
  0xfa   :  { %617 = vrot.lane.b32.xlu0 %v374_v47, %s1230_s20  ;;  %v1435_v59 = vpop.f32.mrb[13].mxu0  ;;  %v1607_v48 = vadd.f32 %v1432_v58, %v1460_v14 }
  0xfb   :  { %1181 = vmatmul.mubr.msk.f32.gmra.mrb[28].mxu0 %vm394_vm2, %v1156_v45  ;;  %v1159_v51 = vpop.f32.mrb[14].mxu1 }
  0xfc   :  { %v384_v53 = vpop.f32.mrb[15].mxu1 }
  0xfd   :  { %619 = vrot.lane.b32.xlu1 %v1156_v45, %s1230_s20  ;;  %1183 = vmatprep.mubr.msk.f32.mxu0 %vm394_vm2, %v384_v53  ;;  %v1437_v60 = vpop.f32.mrb[14].mxu0  ;;  %v1589_v45 = vadd.f32 %v1460_v14, %v1430_v57 }
  0xfe   :  { %621 = vrot.lane.b32.xlu0 %v384_v53, %s1230_s20  ;;  %v1439_v61 = vpop.f32.mrb[15].mxu0  ;;  %v1635_v54 = vadd.f32 %v1437_v60, %v1460_v14 }
  0xff   :  { %1184 = vmatmul.mubr.msk.f32.gmra.mrb[30].mxu0 %vm394_vm2, %v1159_v51  ;;  %v1645_v57 = vadd.f32 %v1460_v14, %v1439_v61 }
 0x101   :  { %623 = vrot.lane.b32.xlu1 %v1159_v51, %s1230_s20  ;;  %v1617_v51 = vadd.f32 %v1460_v14, %v1435_v59 }
 0x153   :  { %v594_v62 = vpop.permute.xlu0 %593 }
 0x154   :  { %1188 = vmatprep.mubr.msk.f32.mxu1 %vm394_vm2, %v594_v62 }
 0x157   :  { %v596_v63 = vpop.permute.xlu0 %595  ;;  %v598_v0 = vpop.permute.xlu1 %597 }
 0x158   :  { %1189 = vmatmul.mubr.msk.f32.vlgmr.msra.gmra.mrb[16].mxu1 %vm394_vm2, %v596_v63 }
 0x159   :  { %1191 = vmatprep.mubr.msk.f32.mxu1 %vm394_vm2, %v598_v0 }
 0x15b   :  { %v600_v1 = vpop.permute.xlu1 %599 }
 0x15c   :  { %1192 = vmatmul.mubr.msk.f32.gmra.mrb[18].mxu1 %vm394_vm2, %v600_v1  ;;  %v602_v2 = vpop.permute.xlu0 %601 }
 0x15d   :  { %1194 = vmatprep.mubr.msk.f32.mxu1 %vm394_vm2, %v602_v2 }
 0x15f   :  { %v604_v3 = vpop.permute.xlu1 %603 }
 0x160   :  { %1195 = vmatmul.mubr.msk.f32.gmra.mrb[20].mxu1 %vm394_vm2, %v604_v3  ;;  %v606_v4 = vpop.permute.xlu0 %605 }
 0x161   :  { %1197 = vmatprep.mubr.msk.f32.mxu1 %vm394_vm2, %v606_v4 }
 0x163   :  { %v608_v5 = vpop.permute.xlu1 %607 }
 0x164   :  { %1198 = vmatmul.mubr.msk.f32.gmra.mrb[22].mxu1 %vm394_vm2, %v608_v5  ;;  %v610_v6 = vpop.permute.xlu0 %609 }
 0x165   :  { %1200 = vmatprep.mubr.msk.f32.mxu1 %vm394_vm2, %v610_v6 }
 0x167   :  { %v612_v7 = vpop.permute.xlu1 %611 }
 0x168   :  { %1201 = vmatmul.mubr.msk.f32.gmra.mrb[24].mxu1 %vm394_vm2, %v612_v7  ;;  %v614_v8 = vpop.permute.xlu0 %613 }
 0x169   :  { %1203 = vmatprep.mubr.msk.f32.mxu1 %vm394_vm2, %v614_v8 }
 0x16b   :  { %v616_v9 = vpop.permute.xlu1 %615 }
 0x16c   :  { %1204 = vmatmul.mubr.msk.f32.gmra.mrb[26].mxu1 %vm394_vm2, %v616_v9  ;;  %v618_v10 = vpop.permute.xlu0 %617 }
 0x16d   :  { %1206 = vmatprep.mubr.msk.f32.mxu1 %vm394_vm2, %v618_v10 }
 0x16f   :  { %v620_v11 = vpop.permute.xlu1 %619 }
 0x170   :  { %1207 = vmatmul.mubr.msk.f32.gmra.mrb[28].mxu1 %vm394_vm2, %v620_v11  ;;  %v622_v12 = vpop.permute.xlu0 %621 }
 0x171   :  { %1209 = vmatprep.mubr.msk.f32.mxu1 %vm394_vm2, %v622_v12 }
 0x173   :  { %v624_v13 = vpop.permute.xlu1 %623 }
 0x174   :  { %1210 = vmatmul.mubr.msk.f32.gmra.mrb[30].mxu1 %vm394_vm2, %v624_v13 }
 0x1b5   :  { %v1164_v17 = vpop.f32.mrb[16].mxu0 }
 0x1b6   :  { %v806_v18 = vadd.f32 %v1164_v17, %v1464_v15  ;;  %v513_v19 = vpop.f32.mrb[17].mxu0 }
 0x1b7   :  { %v805_v21 = vadd.f32 %v513_v19, %v1468_v16 }
 0x1b8   :  { %822 = vst.msk [vmem:[%s1788_s6 + $0x8] sm:$0xff] %vm50_vm0, %v806_v18 }
 0x1b9   :  { %839 = vst.msk [vmem:[%s1788_s6 + $0x8] sm:$0xff] %vm837_vm3, %v1464_v15 }
 0x1ba   :  { %821 = vst.msk [vmem:[%s1788_s6] sm:$0xff] %vm50_vm0, %v805_v21  ;;  %v1167_v23 = vpop.f32.mrb[18].mxu0 }
 0x1bb   :  { %838 = vst.msk [vmem:[%s1788_s6] sm:$0xff] %vm837_vm3, %v1468_v16  ;;  %v808_v25 = vadd.f32 %v1167_v23, %v1473_v20  ;;  %v523_v26 = vpop.f32.mrb[19].mxu0 }
 0x1bc   :  { %v807_v28 = vadd.f32 %v523_v26, %v1478_v22 }
 0x1bd   :  { %824 = vst.msk [vmem:[%s1788_s6 + $0x18] sm:$0xff] %vm50_vm0, %v808_v25 }
 0x1be   :  { %841 = vst.msk [vmem:[%s1788_s6 + $0x18] sm:$0xff] %vm837_vm3, %v1473_v20  ;;  %v1170_v29 = vpop.f32.mrb[20].mxu0 }
 0x1bf   :  { %823 = vst.msk [vmem:[%s1788_s6 + $0x10] sm:$0xff] %vm50_vm0, %v807_v28  ;;  %v810_v31 = vadd.f32 %v1170_v29, %v1500_v24  ;;  %v533_v32 = vpop.f32.mrb[21].mxu0 }
 0x1c0   :  { %840 = vst.msk [vmem:[%s1788_s6 + $0x10] sm:$0xff] %vm837_vm3, %v1478_v22  ;;  %v809_v34 = vadd.f32 %v533_v32, %v1505_v27 }
 0x1c1   :  { %826 = vst.msk [vmem:[%s1788_s6 + $0x28] sm:$0xff] %vm50_vm0, %v810_v31 }
 0x1c2   :  { %843 = vst.msk [vmem:[%s1788_s6 + $0x28] sm:$0xff] %vm837_vm3, %v1500_v24  ;;  %v1173_v35 = vpop.f32.mrb[22].mxu0 }
 0x1c3   :  { %825 = vst.msk [vmem:[%s1788_s6 + $0x20] sm:$0xff] %vm50_vm0, %v809_v34  ;;  %v812_v37 = vadd.f32 %v1173_v35, %v1523_v30  ;;  %v543_v38 = vpop.f32.mrb[23].mxu0 }
 0x1c4   :  { %842 = vst.msk [vmem:[%s1788_s6 + $0x20] sm:$0xff] %vm837_vm3, %v1505_v27  ;;  %v811_v40 = vadd.f32 %v543_v38, %v1533_v33 }
 0x1c5   :  { %828 = vst.msk [vmem:[%s1788_s6 + $0x38] sm:$0xff] %vm50_vm0, %v812_v37 }
 0x1c6   :  { %845 = vst.msk [vmem:[%s1788_s6 + $0x38] sm:$0xff] %vm837_vm3, %v1523_v30  ;;  %v1176_v41 = vpop.f32.mrb[24].mxu0 }
 0x1c7   :  { %827 = vst.msk [vmem:[%s1788_s6 + $0x30] sm:$0xff] %vm50_vm0, %v811_v40  ;;  %v814_v43 = vadd.f32 %v1176_v41, %v1551_v36  ;;  %v553_v44 = vpop.f32.mrb[25].mxu0 }
 0x1c8   :  { %844 = vst.msk [vmem:[%s1788_s6 + $0x30] sm:$0xff] %vm837_vm3, %v1533_v33  ;;  %v813_v46 = vadd.f32 %v553_v44, %v1561_v39 }
 0x1c9   :  { %830 = vst.msk [vmem:[%s1788_s6 + $0x48] sm:$0xff] %vm50_vm0, %v814_v43 }
 0x1ca   :  { %847 = vst.msk [vmem:[%s1788_s6 + $0x48] sm:$0xff] %vm837_vm3, %v1551_v36  ;;  %v1179_v47 = vpop.f32.mrb[26].mxu0 }
 0x1cb   :  { %829 = vst.msk [vmem:[%s1788_s6 + $0x40] sm:$0xff] %vm50_vm0, %v813_v46  ;;  %v816_v49 = vadd.f32 %v1179_v47, %v1579_v42  ;;  %v563_v50 = vpop.f32.mrb[27].mxu0 }
 0x1cc   :  { %846 = vst.msk [vmem:[%s1788_s6 + $0x40] sm:$0xff] %vm837_vm3, %v1561_v39  ;;  %v815_v52 = vadd.f32 %v563_v50, %v1589_v45 }
 0x1cd   :  { %832 = vst.msk [vmem:[%s1788_s6 + $0x58] sm:$0xff] %vm50_vm0, %v816_v49 }
 0x1ce   :  { %849 = vst.msk [vmem:[%s1788_s6 + $0x58] sm:$0xff] %vm837_vm3, %v1579_v42  ;;  %v1182_v53 = vpop.f32.mrb[28].mxu0 }
 0x1cf   :  { %831 = vst.msk [vmem:[%s1788_s6 + $0x50] sm:$0xff] %vm50_vm0, %v815_v52  ;;  %v818_v55 = vadd.f32 %v1182_v53, %v1607_v48  ;;  %v573_v56 = vpop.f32.mrb[29].mxu0 }
 0x1d0   :  { %848 = vst.msk [vmem:[%s1788_s6 + $0x50] sm:$0xff] %vm837_vm3, %v1589_v45  ;;  %v817_v58 = vadd.f32 %v573_v56, %v1617_v51 }
 0x1d1   :  { %834 = vst.msk [vmem:[%s1788_s6 + $0x68] sm:$0xff] %vm50_vm0, %v818_v55 }
 0x1d2   :  { %851 = vst.msk [vmem:[%s1788_s6 + $0x68] sm:$0xff] %vm837_vm3, %v1607_v48  ;;  %v1185_v59 = vpop.f32.mrb[30].mxu0 }
 0x1d3   :  { %833 = vst.msk [vmem:[%s1788_s6 + $0x60] sm:$0xff] %vm50_vm0, %v817_v58  ;;  %v820_v60 = vadd.f32 %v1185_v59, %v1635_v54  ;;  %v583_v61 = vpop.f32.mrb[31].mxu0 }
 0x1d4   :  { %850 = vst.msk [vmem:[%s1788_s6 + $0x60] sm:$0xff] %vm837_vm3, %v1617_v51  ;;  %v819_v62 = vadd.f32 %v583_v61, %v1645_v57 }
 0x1d5   :  { %836 = vst.msk [vmem:[%s1788_s6 + $0x78] sm:$0xff] %vm50_vm0, %v820_v60 }
 0x1d6   :  { %853 = vst.msk [vmem:[%s1788_s6 + $0x78] sm:$0xff] %vm837_vm3, %v1635_v54 }
 0x1d7   :  { %835 = vst.msk [vmem:[%s1788_s6 + $0x70] sm:$0xff] %vm50_vm0, %v819_v62 }
 0x1d8   :  { %852 = vst.msk [vmem:[%s1788_s6 + $0x70] sm:$0xff] %vm837_vm3, %v1645_v57 }
 0x22b   :  { %v1190_v63 = vpop.f32.mrb[16].mxu1 }
 0x22c   :  { %872 = vrot.lane.b32.xlu1 %v1190_v63, %s1231_s24  ;;  %v726_v0 = vpop.f32.mrb[17].mxu1 }
 0x22d   :  { %870 = vrot.lane.b32.xlu0 %v726_v0, %s1231_s24 }
 0x22f   :  { %v1193_v1 = vpop.f32.mrb[18].mxu1 }
 0x230   :  { %876 = vrot.lane.b32.xlu1 %v1193_v1, %s1231_s24  ;;  %v736_v2 = vpop.f32.mrb[19].mxu1 }
 0x231   :  { %874 = vrot.lane.b32.xlu0 %v736_v2, %s1231_s24 }
 0x233   :  { %v1196_v3 = vpop.f32.mrb[20].mxu1 }
 0x234   :  { %880 = vrot.lane.b32.xlu1 %v1196_v3, %s1231_s24  ;;  %v746_v4 = vpop.f32.mrb[21].mxu1 }
 0x235   :  { %878 = vrot.lane.b32.xlu0 %v746_v4, %s1231_s24 }
 0x237   :  { %v1199_v5 = vpop.f32.mrb[22].mxu1 }
 0x238   :  { %884 = vrot.lane.b32.xlu1 %v1199_v5, %s1231_s24  ;;  %v756_v6 = vpop.f32.mrb[23].mxu1 }
 0x239   :  { %882 = vrot.lane.b32.xlu0 %v756_v6, %s1231_s24 }
 0x23b   :  { %v1202_v7 = vpop.f32.mrb[24].mxu1 }
 0x23c   :  { %888 = vrot.lane.b32.xlu1 %v1202_v7, %s1231_s24  ;;  %v766_v8 = vpop.f32.mrb[25].mxu1 }
 0x23d   :  { %886 = vrot.lane.b32.xlu0 %v766_v8, %s1231_s24 }
 0x23f   :  { %v1205_v9 = vpop.f32.mrb[26].mxu1 }
 0x240   :  { %892 = vrot.lane.b32.xlu1 %v1205_v9, %s1231_s24  ;;  %v776_v10 = vpop.f32.mrb[27].mxu1 }
 0x241   :  { %890 = vrot.lane.b32.xlu0 %v776_v10, %s1231_s24 }
 0x243   :  { %v1208_v11 = vpop.f32.mrb[28].mxu1 }
 0x244   :  { %896 = vrot.lane.b32.xlu1 %v1208_v11, %s1231_s24  ;;  %v786_v12 = vpop.f32.mrb[29].mxu1 }
 0x245   :  { %894 = vrot.lane.b32.xlu0 %v786_v12, %s1231_s24 }
 0x247   :  { %v1211_v13 = vpop.f32.mrb[30].mxu1 }
 0x248   :  { %900 = vrot.lane.b32.xlu1 %v1211_v13, %s1231_s24  ;;  %v796_v14 = vpop.f32.mrb[31].mxu1 }
 0x249   :  { %898 = vrot.lane.b32.xlu0 %v796_v14, %s1231_s24 }
 0x29e   :  { %v873_v17 = vpop.permute.xlu1 %872 }
 0x29f   :  { %v919_v18 = vadd.f32 %v873_v17, %v1464_v15  ;;  %v871_v19 = vpop.permute.xlu0 %870 }
 0x2a0   :  { %v918_v21 = vadd.f32 %v871_v19, %v1468_v16 }
 0x2a1   :  { %936 = vst.msk [vmem:[%s1788_s6 + $0x8] sm:$0xff] %vm934_vm4, %v919_v18 }
 0x2a2   :  { %935 = vst.msk [vmem:[%s1788_s6] sm:$0xff] %vm934_vm4, %v918_v21  ;;  %v877_v23 = vpop.permute.xlu1 %876 }
 0x2a3   :  { %v921_v25 = vadd.f32 %v877_v23, %v1473_v20  ;;  %v875_v26 = vpop.permute.xlu0 %874 }
 0x2a4   :  { %v920_v28 = vadd.f32 %v875_v26, %v1478_v22 }
 0x2a5   :  { %938 = vst.msk [vmem:[%s1788_s6 + $0x18] sm:$0xff] %vm934_vm4, %v921_v25 }
 0x2a6   :  { %937 = vst.msk [vmem:[%s1788_s6 + $0x10] sm:$0xff] %vm934_vm4, %v920_v28  ;;  %v881_v15 = vpop.permute.xlu1 %880 }
 0x2a7   :  { %v923_v16 = vadd.f32 %v881_v15, %v1500_v24  ;;  %v879_v29 = vpop.permute.xlu0 %878 }
 0x2a8   :  { %v922_v31 = vadd.f32 %v879_v29, %v1505_v27 }
 0x2a9   :  { %940 = vst.msk [vmem:[%s1788_s6 + $0x28] sm:$0xff] %vm934_vm4, %v923_v16 }
 0x2aa   :  { %939 = vst.msk [vmem:[%s1788_s6 + $0x20] sm:$0xff] %vm934_vm4, %v922_v31  ;;  %v885_v20 = vpop.permute.xlu1 %884 }
 0x2ab   :  { %v925_v22 = vadd.f32 %v885_v20, %v1523_v30  ;;  %v883_v32 = vpop.permute.xlu0 %882 }
 0x2ac   :  { %v924_v34 = vadd.f32 %v883_v32, %v1533_v33 }
 0x2ad   :  { %942 = vst.msk [vmem:[%s1788_s6 + $0x38] sm:$0xff] %vm934_vm4, %v925_v22 }
 0x2ae   :  { %941 = vst.msk [vmem:[%s1788_s6 + $0x30] sm:$0xff] %vm934_vm4, %v924_v34  ;;  %v889_v24 = vpop.permute.xlu1 %888 }
 0x2af   :  { %v927_v27 = vadd.f32 %v889_v24, %v1551_v36  ;;  %v887_v35 = vpop.permute.xlu0 %886 }
 0x2b0   :  { %v926_v37 = vadd.f32 %v887_v35, %v1561_v39 }
 0x2b1   :  { %944 = vst.msk [vmem:[%s1788_s6 + $0x48] sm:$0xff] %vm934_vm4, %v927_v27 }
 0x2b2   :  { %943 = vst.msk [vmem:[%s1788_s6 + $0x40] sm:$0xff] %vm934_vm4, %v926_v37  ;;  %v893_v30 = vpop.permute.xlu1 %892 }
 0x2b3   :  { %v929_v33 = vadd.f32 %v893_v30, %v1579_v42  ;;  %v891_v38 = vpop.permute.xlu0 %890 }
 0x2b4   :  { %v928_v40 = vadd.f32 %v891_v38, %v1589_v45 }
 0x2b5   :  { %946 = vst.msk [vmem:[%s1788_s6 + $0x58] sm:$0xff] %vm934_vm4, %v929_v33 }
 0x2b6   :  { %945 = vst.msk [vmem:[%s1788_s6 + $0x50] sm:$0xff] %vm934_vm4, %v928_v40  ;;  %v897_v36 = vpop.permute.xlu1 %896 }
 0x2b7   :  { %v931_v39 = vadd.f32 %v897_v36, %v1607_v48  ;;  %v895_v41 = vpop.permute.xlu0 %894 }
 0x2b8   :  { %v930_v43 = vadd.f32 %v895_v41, %v1617_v51 }
 0x2b9   :  { %948 = vst.msk [vmem:[%s1788_s6 + $0x68] sm:$0xff] %vm934_vm4, %v931_v39 }
 0x2ba   :  { %947 = vst.msk [vmem:[%s1788_s6 + $0x60] sm:$0xff] %vm934_vm4, %v930_v43  ;;  %v901_v42 = vpop.permute.xlu1 %900 }
 0x2bb   :  { %v933_v44 = vadd.f32 %v901_v42, %v1635_v54  ;;  %v899_v45 = vpop.permute.xlu0 %898 }
 0x2bc   :  { %v932_v46 = vadd.f32 %v899_v45, %v1645_v57 }
 0x2bd   :  { %950 = vst.msk [vmem:[%s1788_s6 + $0x78] sm:$0xff] %vm934_vm4, %v933_v44 }
 0x2be   :  { %949 = vst.msk [vmem:[%s1788_s6 + $0x70] sm:$0xff] %vm934_vm4, %v932_v46 }

// kernel: _attention_lora_qkv_impl.1
= control target key start
LH: loop header
LB: loop body
LE: loop exit
PB: predicated region body
PF: predicated region fallthrough
CT: control target
= control target key end

     0   :  { %vm50_vm0 = vcmask 261120   ;;  %vm443_vm1 = vcmask 1043456   ;;  %vm394_vm2 = vcmask 31744   ;;  %s1230_s20 = smov 124   ;;  %vm837_vm3 = vcmask 523520   ;;  %s1231_s24 = smov 64   ;;  %s1782_s3 = inlined_call_operand.vmem [shape: f32[32,8], index: 3, kind: input, shape index: {}]   ;;  %s1783_s0 = inlined_call_operand.vmem [shape: f32[128,32], index: 0, kind: input, shape index: {}]   ;;  %s1784_s1 = inlined_call_operand.vmem [shape: f32[32,96], index: 1, kind: input, shape index: {}]   ;;  %s1785_s4 = inlined_call_operand.vmem [shape: f32[4,32], index: 4, kind: input, shape index: {}]   ;;  %s1786_s5 = inlined_call_operand.vmem [shape: f32[4,32], index: 5, kind: input, shape index: {}]   ;;  %s1787_s2 = inlined_call_operand.vmem [shape: f32[1,96], index: 2, kind: input, shape index: {}]   ;;  %s1788_s6 = inlined_call_operand.vmem [shape: f32[128,96], index: 6, kind: output, shape index: {}]  }
   0x1   :  { %v244_v0 = vld [vmem:[%s1782_s3] sm:$0xff]  ;;  %v245_v1 = vld [vmem:[%s1782_s3 + $0x8] sm:$0xff]  ;;  %v246_v2 = vld [vmem:[%s1782_s3 + $0x10] sm:$0xff]  ;;  %vm934_vm4 = vcmask 785920  }
   0x2   :  { %v1220_v3 = vpack.c.bf16 %v245_v1, %v244_v0  ;;  %v247_v4 = vld [vmem:[%s1782_s3 + $0x18] sm:$0xff]  ;;  %v23_v5 = vld [vmem:[%s1783_s0] sm:$0xff]  ;;  %v40_v8 = vld [vmem:[%s1784_s1 + $0x8] sm:$0xff] }
   0x3   :  { %v1224_v6 = vpack.c.bf16 %v247_v4, %v246_v2  ;;  %1136 = vmatprep.mubr.msk.f32.mxu1 %vm50_vm0, %v23_v5  ;;  %1104 = vmatprep.mubr.msk.f32.mxu0 %vm50_vm0, %v23_v5  ;;  %v39_v7 = vld [vmem:[%s1784_s1] sm:$0xff]  ;;  %v41_v9 = vld [vmem:[%s1784_s1 + $0x10] sm:$0xff]  ;;  %v42_v10 = vld [vmem:[%s1784_s1 + $0x18] sm:$0xff] }
   0x4   :  { %1221 = vmatprep.subr.bf16.mxu1 %v1220_v3  ;;  %v24_v11 = vld [vmem:[%s1783_s0 + $0x8] sm:$0xff]  ;;  %v1212_v12 = vpack.c.bf16 %v40_v8, %v39_v7  ;;  %v1216_v13 = vpack.c.bf16 %v42_v10, %v41_v9  ;;  %v25_v14 = vld [vmem:[%s1783_s0 + $0x10] sm:$0xff]  ;;  %v26_v15 = vld [vmem:[%s1783_s0 + $0x18] sm:$0xff] }
   0x5   :  { %1223 = vmatpush3.bf16.msra.mxu1 %v1220_v3  ;;  %v27_v16 = vld [vmem:[%s1783_s0 + $0x20] sm:$0xff]  ;;  %v28_v17 = vld [vmem:[%s1783_s0 + $0x28] sm:$0xff]  ;;  %v29_v18 = vld [vmem:[%s1783_s0 + $0x30] sm:$0xff] }
   0x6   :  { %1225 = vmatprep.subr.bf16.mxu1 %v1224_v6  ;;  %1213 = vmatprep.subr.bf16.mxu0 %v1212_v12  ;;  %v30_v19 = vld [vmem:[%s1783_s0 + $0x38] sm:$0xff]  ;;  %v31_v20 = vld [vmem:[%s1783_s0 + $0x40] sm:$0xff]  ;;  %v32_v21 = vld [vmem:[%s1783_s0 + $0x48] sm:$0xff] }
   0x7   :  { %1215 = vmatpush3.bf16.msra.mxu0 %v1212_v12  ;;  %v33_v22 = vld [vmem:[%s1783_s0 + $0x50] sm:$0xff]  ;;  %v34_v23 = vld [vmem:[%s1783_s0 + $0x58] sm:$0xff]  ;;  %v35_v24 = vld [vmem:[%s1783_s0 + $0x60] sm:$0xff] }
   0x8   :  { %1217 = vmatprep.subr.bf16.mxu0 %v1216_v13  ;;  %v36_v25 = vld [vmem:[%s1783_s0 + $0x68] sm:$0xff]  ;;  %v37_v26 = vld [vmem:[%s1783_s0 + $0x70] sm:$0xff]  ;;  %v38_v27 = vld [vmem:[%s1783_s0 + $0x78] sm:$0xff] }
   0x9   :  { %1227 = vmatpush3.bf16.msra.mxu1 %v1224_v6  ;;  %v393_v28 = vld [vmem:[%s1785_s4] sm:$0xf] }
   0xa   :  { %v592_v29 = vld [vmem:[%s1786_s5] sm:$0xf] }
   0xb   :  { %1219 = vmatpush3.bf16.msra.mxu0 %v1216_v13  ;;  %1186 = vmatprep.subr.msk.mxu1 %vm443_vm1, %v592_v29 }
   0xc   :  { %1137 = vmatmul.mubr.msk.f32.vlgmr.msra.gmra.mrb[0].mxu1 %vm50_vm0, %v24_v11  ;;  %1160 = vmatprep.subr.msk.mxu0 %vm443_vm1, %v393_v28 }
   0xd   :  { %1139 = vmatprep.mubr.msk.f32.mxu1 %vm50_vm0, %v25_v14  ;;  %1187 = vmatpush3.msk.msra.mxu1 %vm443_vm1, %v592_v29 }
   0xe   :  { %1105 = vmatmul.mubr.msk.f32.vlgmr.msra.gmra.mrb[0].mxu0 %vm50_vm0, %v24_v11 }
   0xf   :  { %1107 = vmatprep.mubr.msk.f32.mxu0 %vm50_vm0, %v25_v14  ;;  %1161 = vmatpush3.msk.msra.mxu0 %vm443_vm1, %v393_v28  ;;  %v1460_v14 = vld [vmem:[%s1787_s2] ss:$0 sm:$0xff] }
  0x10   :  { %1140 = vmatmul.mubr.msk.f32.gmra.mrb[2].mxu1 %vm50_vm0, %v26_v15 }
  0x11   :  { %1142 = vmatprep.mubr.msk.f32.mxu1 %vm50_vm0, %v27_v16 }
  0x12   :  { %1108 = vmatmul.mubr.msk.f32.gmra.mrb[2].mxu0 %vm50_vm0, %v26_v15 }
  0x13   :  { %1110 = vmatprep.mubr.msk.f32.mxu0 %vm50_vm0, %v27_v16 }
  0x14   :  { %1143 = vmatmul.mubr.msk.f32.gmra.mrb[4].mxu1 %vm50_vm0, %v28_v17 }
  0x15   :  { %1145 = vmatprep.mubr.msk.f32.mxu1 %vm50_vm0, %v29_v18 }
  0x16   :  { %1111 = vmatmul.mubr.msk.f32.gmra.mrb[4].mxu0 %vm50_vm0, %v28_v17 }
  0x17   :  { %1113 = vmatprep.mubr.msk.f32.mxu0 %vm50_vm0, %v29_v18 }
  0x18   :  { %1146 = vmatmul.mubr.msk.f32.gmra.mrb[6].mxu1 %vm50_vm0, %v30_v19 }
  0x19   :  { %1148 = vmatprep.mubr.msk.f32.mxu1 %vm50_vm0, %v31_v20 }
  0x1a   :  { %1114 = vmatmul.mubr.msk.f32.gmra.mrb[6].mxu0 %vm50_vm0, %v30_v19 }
  0x1b   :  { %1116 = vmatprep.mubr.msk.f32.mxu0 %vm50_vm0, %v31_v20 }
  0x1c   :  { %1149 = vmatmul.mubr.msk.f32.gmra.mrb[8].mxu1 %vm50_vm0, %v32_v21 }
  0x1d   :  { %1151 = vmatprep.mubr.msk.f32.mxu1 %vm50_vm0, %v33_v22 }
  0x1e   :  { %1117 = vmatmul.mubr.msk.f32.gmra.mrb[8].mxu0 %vm50_vm0, %v32_v21 }
  0x1f   :  { %1119 = vmatprep.mubr.msk.f32.mxu0 %vm50_vm0, %v33_v22 }
  0x20   :  { %1152 = vmatmul.mubr.msk.f32.gmra.mrb[10].mxu1 %vm50_vm0, %v34_v23 }
  0x21   :  { %1154 = vmatprep.mubr.msk.f32.mxu1 %vm50_vm0, %v35_v24 }
  0x22   :  { %1120 = vmatmul.mubr.msk.f32.gmra.mrb[10].mxu0 %vm50_vm0, %v34_v23 }
  0x23   :  { %1122 = vmatprep.mubr.msk.f32.mxu0 %vm50_vm0, %v35_v24 }
  0x24   :  { %1155 = vmatmul.mubr.msk.f32.gmra.mrb[12].mxu1 %vm50_vm0, %v36_v25 }
  0x25   :  { %1157 = vmatprep.mubr.msk.f32.mxu1 %vm50_vm0, %v37_v26 }
  0x26   :  { %1123 = vmatmul.mubr.msk.f32.gmra.mrb[12].mxu0 %vm50_vm0, %v36_v25 }
  0x27   :  { %1125 = vmatprep.mubr.msk.f32.mxu0 %vm50_vm0, %v37_v26 }
  0x28   :  { %1158 = vmatmul.mubr.msk.f32.gmra.mrb[14].mxu1 %vm50_vm0, %v38_v27 }
  0x2a   :  { %1126 = vmatmul.mubr.msk.f32.gmra.mrb[14].mxu0 %vm50_vm0, %v38_v27 }
  0xdf   :  { %v1138_v30 = vpop.f32.mrb[0].mxu1 }
  0xe0   :  { %v314_v31 = vpop.f32.mrb[1].mxu1 }
  0xe1   :  { %593 = vrot.lane.b32.xlu0 %v314_v31, %s1230_s20  ;;  %1162 = vmatprep.mubr.msk.f32.mxu0 %vm394_vm2, %v314_v31  ;;  %v1396_v42 = vpop.f32.mrb[0].mxu0 }
  0xe2   :  { %1163 = vmatmul.mubr.msk.f32.vlgmr.msra.gmra.mrb[16].mxu0 %vm394_vm2, %v1138_v30  ;;  %v1400_v43 = vpop.f32.mrb[1].mxu0  ;;  %v1464_v15 = vadd.f32 %v1396_v42, %v1460_v14 }
  0xe3   :  { %v1141_v32 = vpop.f32.mrb[2].mxu1  ;;  %v1468_v16 = vadd.f32 %v1460_v14, %v1400_v43 }
  0xe4   :  { %v324_v33 = vpop.f32.mrb[3].mxu1 }
  0xe5   :  { %595 = vrot.lane.b32.xlu0 %v1138_v30, %s1230_s20  ;;  %597 = vrot.lane.b32.xlu1 %v324_v33, %s1230_s20  ;;  %v1403_v44 = vpop.f32.mrb[2].mxu0 }
  0xe6   :  { %1165 = vmatprep.mubr.msk.f32.mxu0 %vm394_vm2, %v324_v33  ;;  %v1406_v46 = vpop.f32.mrb[3].mxu0  ;;  %v1473_v20 = vadd.f32 %v1403_v44, %v1460_v14 }
  0xe7   :  { %1166 = vmatmul.mubr.msk.f32.gmra.mrb[18].mxu0 %vm394_vm2, %v1141_v32  ;;  %v1144_v34 = vpop.f32.mrb[4].mxu1  ;;  %v1478_v22 = vadd.f32 %v1460_v14, %v1406_v46 }
  0xe8   :  { %v334_v35 = vpop.f32.mrb[5].mxu1 }
  0xe9   :  { %599 = vrot.lane.b32.xlu1 %v1141_v32, %s1230_s20  ;;  %1168 = vmatprep.mubr.msk.f32.mxu0 %vm394_vm2, %v334_v35  ;;  %v1408_v48 = vpop.f32.mrb[4].mxu0 }
  0xea   :  { %601 = vrot.lane.b32.xlu0 %v334_v35, %s1230_s20  ;;  %v1412_v49 = vpop.f32.mrb[5].mxu0  ;;  %v1500_v24 = vadd.f32 %v1408_v48, %v1460_v14 }
  0xeb   :  { %1169 = vmatmul.mubr.msk.f32.gmra.mrb[20].mxu0 %vm394_vm2, %v1144_v34  ;;  %v1147_v36 = vpop.f32.mrb[6].mxu1  ;;  %v1505_v27 = vadd.f32 %v1460_v14, %v1412_v49 }
  0xec   :  { %v344_v37 = vpop.f32.mrb[7].mxu1 }
  0xed   :  { %603 = vrot.lane.b32.xlu1 %v1144_v34, %s1230_s20  ;;  %1171 = vmatprep.mubr.msk.f32.mxu0 %vm394_vm2, %v344_v37  ;;  %v1415_v50 = vpop.f32.mrb[6].mxu0 }
  0xee   :  { %605 = vrot.lane.b32.xlu0 %v344_v37, %s1230_s20  ;;  %v1418_v52 = vpop.f32.mrb[7].mxu0  ;;  %v1523_v30 = vadd.f32 %v1415_v50, %v1460_v14 }
  0xef   :  { %1172 = vmatmul.mubr.msk.f32.gmra.mrb[22].mxu0 %vm394_vm2, %v1147_v36  ;;  %v1150_v38 = vpop.f32.mrb[8].mxu1  ;;  %v1533_v33 = vadd.f32 %v1460_v14, %v1418_v52 }
  0xf0   :  { %v354_v39 = vpop.f32.mrb[9].mxu1 }
  0xf1   :  { %607 = vrot.lane.b32.xlu1 %v1147_v36, %s1230_s20  ;;  %1174 = vmatprep.mubr.msk.f32.mxu0 %vm394_vm2, %v354_v39  ;;  %v1420_v54 = vpop.f32.mrb[8].mxu0 }
  0xf2   :  { %609 = vrot.lane.b32.xlu0 %v354_v39, %s1230_s20  ;;  %v1424_v55 = vpop.f32.mrb[9].mxu0  ;;  %v1551_v36 = vadd.f32 %v1420_v54, %v1460_v14 }
  0xf3   :  { %1175 = vmatmul.mubr.msk.f32.gmra.mrb[24].mxu0 %vm394_vm2, %v1150_v38  ;;  %v1153_v40 = vpop.f32.mrb[10].mxu1  ;;  %v1561_v39 = vadd.f32 %v1460_v14, %v1424_v55 }
  0xf4   :  { %v364_v41 = vpop.f32.mrb[11].mxu1 }
  0xf5   :  { %611 = vrot.lane.b32.xlu1 %v1150_v38, %s1230_s20  ;;  %1177 = vmatprep.mubr.msk.f32.mxu0 %vm394_vm2, %v364_v41  ;;  %v1427_v56 = vpop.f32.mrb[10].mxu0 }
  0xf6   :  { %613 = vrot.lane.b32.xlu0 %v364_v41, %s1230_s20  ;;  %v1430_v57 = vpop.f32.mrb[11].mxu0  ;;  %v1579_v42 = vadd.f32 %v1427_v56, %v1460_v14 }
  0xf7   :  { %1178 = vmatmul.mubr.msk.f32.gmra.mrb[26].mxu0 %vm394_vm2, %v1153_v40  ;;  %v1156_v45 = vpop.f32.mrb[12].mxu1 }
  0xf8   :  { %v374_v47 = vpop.f32.mrb[13].mxu1 }
  0xf9   :  { %615 = vrot.lane.b32.xlu1 %v1153_v40, %s1230_s20  ;;  %1180 = vmatprep.mubr.msk.f32.mxu0 %vm394_vm2, %v374_v47  ;;  %v1432_v58 = vpop.f32.mrb[12].mxu0 }
  0xfa   :  { %617 = vrot.lane.b32.xlu0 %v374_v47, %s1230_s20  ;;  %v1435_v59 = vpop.f32.mrb[13].mxu0  ;;  %v1607_v48 = vadd.f32 %v1432_v58, %v1460_v14 }
  0xfb   :  { %1181 = vmatmul.mubr.msk.f32.gmra.mrb[28].mxu0 %vm394_vm2, %v1156_v45  ;;  %v1159_v51 = vpop.f32.mrb[14].mxu1 }
  0xfc   :  { %v384_v53 = vpop.f32.mrb[15].mxu1 }
  0xfd   :  { %619 = vrot.lane.b32.xlu1 %v1156_v45, %s1230_s20  ;;  %1183 = vmatprep.mubr.msk.f32.mxu0 %vm394_vm2, %v384_v53  ;;  %v1437_v60 = vpop.f32.mrb[14].mxu0  ;;  %v1589_v45 = vadd.f32 %v1460_v14, %v1430_v57 }
  0xfe   :  { %621 = vrot.lane.b32.xlu0 %v384_v53, %s1230_s20  ;;  %v1439_v61 = vpop.f32.mrb[15].mxu0  ;;  %v1635_v54 = vadd.f32 %v1437_v60, %v1460_v14 }
  0xff   :  { %1184 = vmatmul.mubr.msk.f32.gmra.mrb[30].mxu0 %vm394_vm2, %v1159_v51  ;;  %v1645_v57 = vadd.f32 %v1460_v14, %v1439_v61 }
 0x101   :  { %623 = vrot.lane.b32.xlu1 %v1159_v51, %s1230_s20  ;;  %v1617_v51 = vadd.f32 %v1460_v14, %v1435_v59 }
 0x153   :  { %v594_v62 = vpop.permute.xlu0 %593 }
 0x154   :  { %1188 = vmatprep.mubr.msk.f32.mxu1 %vm394_vm2, %v594_v62 }
 0x157   :  { %v596_v63 = vpop.permute.xlu0 %595  ;;  %v598_v0 = vpop.permute.xlu1 %597 }
 0x158   :  { %1189 = vmatmul.mubr.msk.f32.vlgmr.msra.gmra.mrb[16].mxu1 %vm394_vm2, %v596_v63 }
 0x159   :  { %1191 = vmatprep.mubr.msk.f32.mxu1 %vm394_vm2, %v598_v0 }
 0x15b   :  { %v600_v1 = vpop.permute.xlu1 %599 }
 0x15c   :  { %1192 = vmatmul.mubr.msk.f32.gmra.mrb[18].mxu1 %vm394_vm2, %v600_v1  ;;  %v602_v2 = vpop.permute.xlu0 %601 }
 0x15d   :  { %1194 = vmatprep.mubr.msk.f32.mxu1 %vm394_vm2, %v602_v2 }
 0x15f   :  { %v604_v3 = vpop.permute.xlu1 %603 }
 0x160   :  { %1195 = vmatmul.mubr.msk.f32.gmra.mrb[20].mxu1 %vm394_vm2, %v604_v3  ;;  %v606_v4 = vpop.permute.xlu0 %605 }
 0x161   :  { %1197 = vmatprep.mubr.msk.f32.mxu1 %vm394_vm2, %v606_v4 }
 0x163   :  { %v608_v5 = vpop.permute.xlu1 %607 }
 0x164   :  { %1198 = vmatmul.mubr.msk.f32.gmra.mrb[22].mxu1 %vm394_vm2, %v608_v5  ;;  %v610_v6 = vpop.permute.xlu0 %609 }
 0x165   :  { %1200 = vmatprep.mubr.msk.f32.mxu1 %vm394_vm2, %v610_v6 }
 0x167   :  { %v612_v7 = vpop.permute.xlu1 %611 }
 0x168   :  { %1201 = vmatmul.mubr.msk.f32.gmra.mrb[24].mxu1 %vm394_vm2, %v612_v7  ;;  %v614_v8 = vpop.permute.xlu0 %613 }
 0x169   :  { %1203 = vmatprep.mubr.msk.f32.mxu1 %vm394_vm2, %v614_v8 }
 0x16b   :  { %v616_v9 = vpop.permute.xlu1 %615 }
 0x16c   :  { %1204 = vmatmul.mubr.msk.f32.gmra.mrb[26].mxu1 %vm394_vm2, %v616_v9  ;;  %v618_v10 = vpop.permute.xlu0 %617 }
 0x16d   :  { %1206 = vmatprep.mubr.msk.f32.mxu1 %vm394_vm2, %v618_v10 }
 0x16f   :  { %v620_v11 = vpop.permute.xlu1 %619 }
 0x170   :  { %1207 = vmatmul.mubr.msk.f32.gmra.mrb[28].mxu1 %vm394_vm2, %v620_v11  ;;  %v622_v12 = vpop.permute.xlu0 %621 }
 0x171   :  { %1209 = vmatprep.mubr.msk.f32.mxu1 %vm394_vm2, %v622_v12 }
 0x173   :  { %v624_v13 = vpop.permute.xlu1 %623 }
 0x174   :  { %1210 = vmatmul.mubr.msk.f32.gmra.mrb[30].mxu1 %vm394_vm2, %v624_v13 }
 0x1b5   :  { %v1164_v17 = vpop.f32.mrb[16].mxu0 }
 0x1b6   :  { %v806_v18 = vadd.f32 %v1164_v17, %v1464_v15  ;;  %v513_v19 = vpop.f32.mrb[17].mxu0 }
 0x1b7   :  { %v805_v21 = vadd.f32 %v513_v19, %v1468_v16 }
 0x1b8   :  { %822 = vst.msk [vmem:[%s1788_s6 + $0x8] sm:$0xff] %vm50_vm0, %v806_v18 }
 0x1b9   :  { %839 = vst.msk [vmem:[%s1788_s6 + $0x8] sm:$0xff] %vm837_vm3, %v1464_v15 }
 0x1ba   :  { %821 = vst.msk [vmem:[%s1788_s6] sm:$0xff] %vm50_vm0, %v805_v21  ;;  %v1167_v23 = vpop.f32.mrb[18].mxu0 }
 0x1bb   :  { %838 = vst.msk [vmem:[%s1788_s6] sm:$0xff] %vm837_vm3, %v1468_v16  ;;  %v808_v25 = vadd.f32 %v1167_v23, %v1473_v20  ;;  %v523_v26 = vpop.f32.mrb[19].mxu0 }
 0x1bc   :  { %v807_v28 = vadd.f32 %v523_v26, %v1478_v22 }
 0x1bd   :  { %824 = vst.msk [vmem:[%s1788_s6 + $0x18] sm:$0xff] %vm50_vm0, %v808_v25 }
 0x1be   :  { %841 = vst.msk [vmem:[%s1788_s6 + $0x18] sm:$0xff] %vm837_vm3, %v1473_v20  ;;  %v1170_v29 = vpop.f32.mrb[20].mxu0 }
 0x1bf   :  { %823 = vst.msk [vmem:[%s1788_s6 + $0x10] sm:$0xff] %vm50_vm0, %v807_v28  ;;  %v810_v31 = vadd.f32 %v1170_v29, %v1500_v24  ;;  %v533_v32 = vpop.f32.mrb[21].mxu0 }
 0x1c0   :  { %840 = vst.msk [vmem:[%s1788_s6 + $0x10] sm:$0xff] %vm837_vm3, %v1478_v22  ;;  %v809_v34 = vadd.f32 %v533_v32, %v1505_v27 }
 0x1c1   :  { %826 = vst.msk [vmem:[%s1788_s6 + $0x28] sm:$0xff] %vm50_vm0, %v810_v31 }
 0x1c2   :  { %843 = vst.msk [vmem:[%s1788_s6 + $0x28] sm:$0xff] %vm837_vm3, %v1500_v24  ;;  %v1173_v35 = vpop.f32.mrb[22].mxu0 }
 0x1c3   :  { %825 = vst.msk [vmem:[%s1788_s6 + $0x20] sm:$0xff] %vm50_vm0, %v809_v34  ;;  %v812_v37 = vadd.f32 %v1173_v35, %v1523_v30  ;;  %v543_v38 = vpop.f32.mrb[23].mxu0 }
 0x1c4   :  { %842 = vst.msk [vmem:[%s1788_s6 + $0x20] sm:$0xff] %vm837_vm3, %v1505_v27  ;;  %v811_v40 = vadd.f32 %v543_v38, %v1533_v33 }
 0x1c5   :  { %828 = vst.msk [vmem:[%s1788_s6 + $0x38] sm:$0xff] %vm50_vm0, %v812_v37 }
 0x1c6   :  { %845 = vst.msk [vmem:[%s1788_s6 + $0x38] sm:$0xff] %vm837_vm3, %v1523_v30  ;;  %v1176_v41 = vpop.f32.mrb[24].mxu0 }
 0x1c7   :  { %827 = vst.msk [vmem:[%s1788_s6 + $0x30] sm:$0xff] %vm50_vm0, %v811_v40  ;;  %v814_v43 = vadd.f32 %v1176_v41, %v1551_v36  ;;  %v553_v44 = vpop.f32.mrb[25].mxu0 }
 0x1c8   :  { %844 = vst.msk [vmem:[%s1788_s6 + $0x30] sm:$0xff] %vm837_vm3, %v1533_v33  ;;  %v813_v46 = vadd.f32 %v553_v44, %v1561_v39 }
 0x1c9   :  { %830 = vst.msk [vmem:[%s1788_s6 + $0x48] sm:$0xff] %vm50_vm0, %v814_v43 }
 0x1ca   :  { %847 = vst.msk [vmem:[%s1788_s6 + $0x48] sm:$0xff] %vm837_vm3, %v1551_v36  ;;  %v1179_v47 = vpop.f32.mrb[26].mxu0 }
 0x1cb   :  { %829 = vst.msk [vmem:[%s1788_s6 + $0x40] sm:$0xff] %vm50_vm0, %v813_v46  ;;  %v816_v49 = vadd.f32 %v1179_v47, %v1579_v42  ;;  %v563_v50 = vpop.f32.mrb[27].mxu0 }
 0x1cc   :  { %846 = vst.msk [vmem:[%s1788_s6 + $0x40] sm:$0xff] %vm837_vm3, %v1561_v39  ;;  %v815_v52 = vadd.f32 %v563_v50, %v1589_v45 }
 0x1cd   :  { %832 = vst.msk [vmem:[%s1788_s6 + $0x58] sm:$0xff] %vm50_vm0, %v816_v49 }
 0x1ce   :  { %849 = vst.msk [vmem:[%s1788_s6 + $0x58] sm:$0xff] %vm837_vm3, %v1579_v42  ;;  %v1182_v53 = vpop.f32.mrb[28].mxu0 }
 0x1cf   :  { %831 = vst.msk [vmem:[%s1788_s6 + $0x50] sm:$0xff] %vm50_vm0, %v815_v52  ;;  %v818_v55 = vadd.f32 %v1182_v53, %v1607_v48  ;;  %v573_v56 = vpop.f32.mrb[29].mxu0 }
 0x1d0   :  { %848 = vst.msk [vmem:[%s1788_s6 + $0x50] sm:$0xff] %vm837_vm3, %v1589_v45  ;;  %v817_v58 = vadd.f32 %v573_v56, %v1617_v51 }
 0x1d1   :  { %834 = vst.msk [vmem:[%s1788_s6 + $0x68] sm:$0xff] %vm50_vm0, %v818_v55 }
 0x1d2   :  { %851 = vst.msk [vmem:[%s1788_s6 + $0x68] sm:$0xff] %vm837_vm3, %v1607_v48  ;;  %v1185_v59 = vpop.f32.mrb[30].mxu0 }
 0x1d3   :  { %833 = vst.msk [vmem:[%s1788_s6 + $0x60] sm:$0xff] %vm50_vm0, %v817_v58  ;;  %v820_v60 = vadd.f32 %v1185_v59, %v1635_v54  ;;  %v583_v61 = vpop.f32.mrb[31].mxu0 }
 0x1d4   :  { %850 = vst.msk [vmem:[%s1788_s6 + $0x60] sm:$0xff] %vm837_vm3, %v1617_v51  ;;  %v819_v62 = vadd.f32 %v583_v61, %v1645_v57 }
 0x1d5   :  { %836 = vst.msk [vmem:[%s1788_s6 + $0x78] sm:$0xff] %vm50_vm0, %v820_v60 }
 0x1d6   :  { %853 = vst.msk [vmem:[%s1788_s6 + $0x78] sm:$0xff] %vm837_vm3, %v1635_v54 }
 0x1d7   :  { %835 = vst.msk [vmem:[%s1788_s6 + $0x70] sm:$0xff] %vm50_vm0, %v819_v62 }
 0x1d8   :  { %852 = vst.msk [vmem:[%s1788_s6 + $0x70] sm:$0xff] %vm837_vm3, %v1645_v57 }
 0x22b   :  { %v1190_v63 = vpop.f32.mrb[16].mxu1 }
 0x22c   :  { %872 = vrot.lane.b32.xlu1 %v1190_v63, %s1231_s24  ;;  %v726_v0 = vpop.f32.mrb[17].mxu1 }
 0x22d   :  { %870 = vrot.lane.b32.xlu0 %v726_v0, %s1231_s24 }
 0x22f   :  { %v1193_v1 = vpop.f32.mrb[18].mxu1 }
 0x230   :  { %876 = vrot.lane.b32.xlu1 %v1193_v1, %s1231_s24  ;;  %v736_v2 = vpop.f32.mrb[19].mxu1 }
 0x231   :  { %874 = vrot.lane.b32.xlu0 %v736_v2, %s1231_s24 }
 0x233   :  { %v1196_v3 = vpop.f32.mrb[20].mxu1 }
 0x234   :  { %880 = vrot.lane.b32.xlu1 %v1196_v3, %s1231_s24  ;;  %v746_v4 = vpop.f32.mrb[21].mxu1 }
 0x235   :  { %878 = vrot.lane.b32.xlu0 %v746_v4, %s1231_s24 }
 0x237   :  { %v1199_v5 = vpop.f32.mrb[22].mxu1 }
 0x238   :  { %884 = vrot.lane.b32.xlu1 %v1199_v5, %s1231_s24  ;;  %v756_v6 = vpop.f32.mrb[23].mxu1 }
 0x239   :  { %882 = vrot.lane.b32.xlu0 %v756_v6, %s1231_s24 }
 0x23b   :  { %v1202_v7 = vpop.f32.mrb[24].mxu1 }
 0x23c   :  { %888 = vrot.lane.b32.xlu1 %v1202_v7, %s1231_s24  ;;  %v766_v8 = vpop.f32.mrb[25].mxu1 }
 0x23d   :  { %886 = vrot.lane.b32.xlu0 %v766_v8, %s1231_s24 }
 0x23f   :  { %v1205_v9 = vpop.f32.mrb[26].mxu1 }
 0x240   :  { %892 = vrot.lane.b32.xlu1 %v1205_v9, %s1231_s24  ;;  %v776_v10 = vpop.f32.mrb[27].mxu1 }
 0x241   :  { %890 = vrot.lane.b32.xlu0 %v776_v10, %s1231_s24 }
 0x243   :  { %v1208_v11 = vpop.f32.mrb[28].mxu1 }
 0x244   :  { %896 = vrot.lane.b32.xlu1 %v1208_v11, %s1231_s24  ;;  %v786_v12 = vpop.f32.mrb[29].mxu1 }
 0x245   :  { %894 = vrot.lane.b32.xlu0 %v786_v12, %s1231_s24 }
 0x247   :  { %v1211_v13 = vpop.f32.mrb[30].mxu1 }
 0x248   :  { %900 = vrot.lane.b32.xlu1 %v1211_v13, %s1231_s24  ;;  %v796_v14 = vpop.f32.mrb[31].mxu1 }
 0x249   :  { %898 = vrot.lane.b32.xlu0 %v796_v14, %s1231_s24 }
 0x29e   :  { %v873_v17 = vpop.permute.xlu1 %872 }
 0x29f   :  { %v919_v18 = vadd.f32 %v873_v17, %v1464_v15  ;;  %v871_v19 = vpop.permute.xlu0 %870 }
 0x2a0   :  { %v918_v21 = vadd.f32 %v871_v19, %v1468_v16 }
 0x2a1   :  { %936 = vst.msk [vmem:[%s1788_s6 + $0x8] sm:$0xff] %vm934_vm4, %v919_v18 }
 0x2a2   :  { %935 = vst.msk [vmem:[%s1788_s6] sm:$0xff] %vm934_vm4, %v918_v21  ;;  %v877_v23 = vpop.permute.xlu1 %876 }
 0x2a3   :  { %v921_v25 = vadd.f32 %v877_v23, %v1473_v20  ;;  %v875_v26 = vpop.permute.xlu0 %874 }
 0x2a4   :  { %v920_v28 = vadd.f32 %v875_v26, %v1478_v22 }
 0x2a5   :  { %938 = vst.msk [vmem:[%s1788_s6 + $0x18] sm:$0xff] %vm934_vm4, %v921_v25 }
 0x2a6   :  { %937 = vst.msk [vmem:[%s1788_s6 + $0x10] sm:$0xff] %vm934_vm4, %v920_v28  ;;  %v881_v15 = vpop.permute.xlu1 %880 }
 0x2a7   :  { %v923_v16 = vadd.f32 %v881_v15, %v1500_v24  ;;  %v879_v29 = vpop.permute.xlu0 %878 }
 0x2a8   :  { %v922_v31 = vadd.f32 %v879_v29, %v1505_v27 }
 0x2a9   :  { %940 = vst.msk [vmem:[%s1788_s6 + $0x28] sm:$0xff] %vm934_vm4, %v923_v16 }
 0x2aa   :  { %939 = vst.msk [vmem:[%s1788_s6 + $0x20] sm:$0xff] %vm934_vm4, %v922_v31  ;;  %v885_v20 = vpop.permute.xlu1 %884 }
 0x2ab   :  { %v925_v22 = vadd.f32 %v885_v20, %v1523_v30  ;;  %v883_v32 = vpop.permute.xlu0 %882 }
 0x2ac   :  { %v924_v34 = vadd.f32 %v883_v32, %v1533_v33 }
 0x2ad   :  { %942 = vst.msk [vmem:[%s1788_s6 + $0x38] sm:$0xff] %vm934_vm4, %v925_v22 }
 0x2ae   :  { %941 = vst.msk [vmem:[%s1788_s6 + $0x30] sm:$0xff] %vm934_vm4, %v924_v34  ;;  %v889_v24 = vpop.permute.xlu1 %888 }
 0x2af   :  { %v927_v27 = vadd.f32 %v889_v24, %v1551_v36  ;;  %v887_v35 = vpop.permute.xlu0 %886 }
 0x2b0   :  { %v926_v37 = vadd.f32 %v887_v35, %v1561_v39 }
 0x2b1   :  { %944 = vst.msk [vmem:[%s1788_s6 + $0x48] sm:$0xff] %vm934_vm4, %v927_v27 }
 0x2b2   :  { %943 = vst.msk [vmem:[%s1788_s6 + $0x40] sm:$0xff] %vm934_vm4, %v926_v37  ;;  %v893_v30 = vpop.permute.xlu1 %892 }
 0x2b3   :  { %v929_v33 = vadd.f32 %v893_v30, %v1579_v42  ;;  %v891_v38 = vpop.permute.xlu0 %890 }
 0x2b4   :  { %v928_v40 = vadd.f32 %v891_v38, %v1589_v45 }
 0x2b5   :  { %946 = vst.msk [vmem:[%s1788_s6 + $0x58] sm:$0xff] %vm934_vm4, %v929_v33 }
 0x2b6   :  { %945 = vst.msk [vmem:[%s1788_s6 + $0x50] sm:$0xff] %vm934_vm4, %v928_v40  ;;  %v897_v36 = vpop.permute.xlu1 %896 }
 0x2b7   :  { %v931_v39 = vadd.f32 %v897_v36, %v1607_v48  ;;  %v895_v41 = vpop.permute.xlu0 %894 }
 0x2b8   :  { %v930_v43 = vadd.f32 %v895_v41, %v1617_v51 }
 0x2b9   :  { %948 = vst.msk [vmem:[%s1788_s6 + $0x68] sm:$0xff] %vm934_vm4, %v931_v39 }
 0x2ba   :  { %947 = vst.msk [vmem:[%s1788_s6 + $0x60] sm:$0xff] %vm934_vm4, %v930_v43  ;;  %v901_v42 = vpop.permute.xlu1 %900 }
 0x2bb   :  { %v933_v44 = vadd.f32 %v901_v42, %v1635_v54  ;;  %v899_v45 = vpop.permute.xlu0 %898 }
 0x2bc   :  { %v932_v46 = vadd.f32 %v899_v45, %v1645_v57 }
 0x2bd   :  { %950 = vst.msk [vmem:[%s1788_s6 + $0x78] sm:$0xff] %vm934_vm4, %v933_v44 }
 0x2be   :  { %949 = vst.msk [vmem:[%s1788_s6 + $0x70] sm:$0xff] %vm934_vm4, %v932_v46 }

</bundles_post_ra>
